<compile_context>
chip_gen: v7x
topology: tpu7x:2x2x1
jax: 0.10.0
libtpu: 0.0.40
codegen_flags: <defaults>
</compile_context>

<pallas_src>
import math
import jax
import jax.numpy as jnp
from jax.experimental import pallas as pl
from jax.experimental.pallas import tpu as pltpu

D_MODEL = 32      # d_model
N_HEADS = 8
HEAD_DIM = 32
HIDDEN = N_HEADS * HEAD_DIM   # 256
EPS = 1e-5                    # nn.LayerNorm default
SCALE = math.sqrt(32.0)


def _layer_norm(x, gamma, beta):
    # x: (M, D); gamma/beta: (D,)
    mean = jnp.mean(x, axis=-1, keepdims=True)
    var = jnp.mean((x - mean) ** 2, axis=-1, keepdims=True)
    return (x - mean) * jax.lax.rsqrt(var + EPS) * gamma + beta


def _make_kernel(b_blk, seq):
    """Kernel processing b_blk batch elements (M = b_blk*seq rows) per grid step."""

    def kernel(x_ref, wqkv_ref, bqkv_ref, w3_ref, b3_ref, w1_ref, b1_ref,
               gamma_ref, beta_ref, o_ref):
        xm = x_ref[0]                                             # (M, D)

        # Fused Q/K/V projection, one wide MXU pass (scale pre-folded into Q).
        qkv = jnp.dot(xm, wqkv_ref[...],
                      preferred_element_type=jnp.float32) + bqkv_ref[0]   # (M, 768)

        gamma = gamma_ref[0]
        beta = beta_ref[0]

        out3_rows = []
        for b in range(b_blk):                       # static loop over batch rows
            r0 = b * seq
            acc = None
            for h in range(N_HEADS):                 # static loop over heads
                c0 = h * HEAD_DIM
                q_h = qkv[r0:r0 + seq, c0:c0 + HEAD_DIM]                       # (S, 32)
                k_h = qkv[r0:r0 + seq, HIDDEN + c0:HIDDEN + c0 + HEAD_DIM]     # (S, 32)
                v_h = qkv[r0:r0 + seq, 2 * HIDDEN + c0:2 * HIDDEN + c0 + HEAD_DIM]
                # scores = q_h @ k_h^T (already scaled), no explicit transpose.
                s_h = jax.lax.dot_general(
                    q_h, k_h, (((1,), (1,)), ((), ())),
                    preferred_element_type=jnp.float32)                        # (S, S)
                s_h = s_h - jnp.max(s_h, axis=-1, keepdims=True)
                p = jnp.exp(s_h)
                attn = p * pl.reciprocal(jnp.sum(p, axis=-1, keepdims=True),
                                         approx=True)
                ctx_h = jnp.dot(attn, v_h,
                                preferred_element_type=jnp.float32)            # (S, 32)
                # Fold output projection per head (no (S, 256) concat ever built).
                part = jnp.dot(ctx_h, w3_ref[h],
                               preferred_element_type=jnp.float32)             # (S, D)
                acc = part if acc is None else acc + part
            out3_rows.append(acc)

        out3 = out3_rows[0] if b_blk == 1 else jnp.concatenate(out3_rows, axis=0)
        out3 = out3 + b3_ref[0]                                   # (M, D)

        # Residual + shared LayerNorm, extra Linear, residual + same LayerNorm,
        # all run over the full M-row slab.
        h1 = _layer_norm(xm + out3, gamma, beta)                  # (M, D)
        out1 = jnp.dot(h1, w1_ref[...],
                       preferred_element_type=jnp.float32) + b1_ref[0]
        o_ref[0] = _layer_norm(h1 + out1, gamma, beta)

    return kernel


def attention_forward(x, packed):
    """x: (B, S, d_model) float32. packed: tuple from pack_params()."""
    B, S, D = x.shape
    (wqkv, bqkv, w3_heads, b3, w1_t, b1, gamma, beta) = packed

    # Split the batch across at most 2 parallel grid steps (dual TC on v7x);
    # each step batches b_blk elements to amortize per-step pipeline overhead.
    nc = 2 if (B >= 2 and B % 2 == 0) else 1
    b_blk = B // nc
    m = b_blk * S
    xr = x.reshape(nc, m, D)

    weights = [wqkv, bqkv, w3_heads, b3, w1_t, b1, gamma, beta]

    def full_spec(a):
        nd = a.ndim
        return pl.BlockSpec(a.shape, lambda c, _nd=nd: (0,) * _nd)

    out = pl.pallas_call(
        _make_kernel(b_blk, S),
        out_shape=jax.ShapeDtypeStruct((nc, m, D), jnp.float32),
        grid=(nc,),
        in_specs=[pl.BlockSpec((1, m, D), lambda c: (c, 0, 0))]
                 + [full_spec(w) for w in weights],
        out_specs=pl.BlockSpec((1, m, D), lambda c: (c, 0, 0)),
        compiler_params=pltpu.CompilerParams(dimension_semantics=("parallel",)),
    )(xr, *weights)
    return out.reshape(B, S, D)


def init_params(key, d_model=D_MODEL):
    """Raw parameters mimicking nn.Linear / nn.LayerNorm shapes (torch layout)."""
    def linear(key, out_f, in_f):
        kw, kb = jax.random.split(key)
        bound = 1.0 / math.sqrt(in_f)
        w = jax.random.uniform(kw, (out_f, in_f), jnp.float32, -bound, bound)
        b = jax.random.uniform(kb, (out_f,), jnp.float32, -bound, bound)
        return w, b

    ks = jax.random.split(key, 5)
    wq, bq = linear(ks[0], HIDDEN, d_model)   # liner_q
    wk, bk = linear(ks[1], HIDDEN, d_model)   # liner_k
    wv, bv = linear(ks[2], HIDDEN, d_model)   # liner_v
    w3, b3 = linear(ks[3], d_model, HIDDEN)   # liner3
    w1, b1 = linear(ks[4], d_model, d_model)  # linner1
    return dict(wq=wq, bq=bq, wk=wk, bk=bk, wv=wv, bv=bv, w3=w3, b3=b3,
                w1=w1, b1=b1,
                gamma=jnp.ones((d_model,), jnp.float32),   # layer_norm weight
                beta=jnp.zeros((d_model,), jnp.float32))   # layer_norm bias


def pack_params(p):
    """One-time glue: fuse QKV, fold the 1/sqrt(32) scale, split w3 per head."""
    inv_scale = 1.0 / SCALE
    wqkv = jnp.concatenate(
        [p["wq"].T * inv_scale, p["wk"].T, p["wv"].T], axis=1)          # (32, 768)
    bqkv = jnp.concatenate(
        [p["bq"] * inv_scale, p["bk"], p["bv"]])[None, :]               # (1, 768)
    w3_heads = p["w3"].T.reshape(N_HEADS, HEAD_DIM, D_MODEL)            # (8, 32, 32)
    return (wqkv, bqkv, w3_heads, p["b3"][None, :],
            p["w1"].T, p["b1"][None, :],
            p["gamma"][None, :], p["beta"][None, :])


def reference_forward(x, p):
    """Pure-JAX reference mirroring the PyTorch forward (for validation)."""
    B, S, D = x.shape

    def ln(y):
        mean = jnp.mean(y, axis=-1, keepdims=True)
        var = jnp.mean((y - mean) ** 2, axis=-1, keepdims=True)
        return (y - mean) / jnp.sqrt(var + EPS) * p["gamma"] + p["beta"]

    q = (x @ p["wq"].T + p["bq"]).reshape(B, S, N_HEADS, HEAD_DIM).transpose(0, 2, 1, 3)
    k = (x @ p["wk"].T + p["bk"]).reshape(B, S, N_HEADS, HEAD_DIM).transpose(0, 2, 1, 3)
    v = (x @ p["wv"].T + p["bv"]).reshape(B, S, N_HEADS, HEAD_DIM).transpose(0, 2, 1, 3)
    scores = jnp.einsum("bhqd,bhkd->bhqk", q, k) / SCALE
    attn = jax.nn.softmax(scores, axis=-1)
    ctx = jnp.einsum("bhqk,bhkd->bhqd", attn, v).transpose(0, 2, 1, 3).reshape(B, S, HIDDEN)
    out = ctx @ p["w3"].T + p["b3"]
    enc = ln(x + out)
    out = enc @ p["w1"].T + p["b1"]
    return ln(enc + out)


if __name__ == "__main__":
    key = jax.random.PRNGKey(0)
    kx, kp = jax.random.split(key)

    B, S = 2, 8
    x = jax.random.normal(kx, (B, S, D_MODEL), dtype=jnp.float32)
    raw = init_params(kp, D_MODEL)
    packed = pack_params(raw)

    out = attention_forward(x, packed)
    out = jax.block_until_ready(out)

    ref = reference_forward(x, raw)
    assert out.shape == (B, S, D_MODEL)
    # approx reciprocal in the softmax changes ULPs; keep a modest tolerance.
    assert jnp.allclose(out, ref, atol=2e-3, rtol=2e-3), "mismatch vs reference"

    print("KERNEL_OK")
</pallas_src>

<mosaic_0001>
module attributes {stable_mosaic.version = 11 : i64} {
  func.func @kernel(%arg0: i32, %arg1: memref<1x8x32xf32, #tpu.memory_space<vmem>>, %arg2: memref<32x768xf32, #tpu.memory_space<vmem>>, %arg3: memref<1x768xf32, #tpu.memory_space<vmem>>, %arg4: memref<8x32x32xf32, #tpu.memory_space<vmem>>, %arg5: memref<1x32xf32, #tpu.memory_space<vmem>>, %arg6: memref<32x32xf32, #tpu.memory_space<vmem>>, %arg7: memref<1x32xf32, #tpu.memory_space<vmem>>, %arg8: memref<1x32xf32, #tpu.memory_space<vmem>>, %arg9: memref<1x32xf32, #tpu.memory_space<vmem>>, %arg10: memref<1x8x32xf32, #tpu.memory_space<vmem>>) attributes {dimension_semantics = [#tpu.dimension_semantics<parallel>], iteration_bounds = array<i64: 2>, scalar_prefetch = 0 : i64, scratch_operands = 0 : i64, tpu.core_type = #tpu.core_type<tc>, window_params = [{transform_indices = @transform_0, window_bounds = array<i64: 1, 8, 32>}, {pipeline_mode = #tpu.pipeline_mode<synchronous>, transform_indices = @transform_1, window_bounds = array<i64: 32, 768>}, {pipeline_mode = #tpu.pipeline_mode<synchronous>, transform_indices = @transform_2, window_bounds = array<i64: 1, 768>}, {pipeline_mode = #tpu.pipeline_mode<synchronous>, transform_indices = @transform_3, window_bounds = array<i64: 8, 32, 32>}, {pipeline_mode = #tpu.pipeline_mode<synchronous>, transform_indices = @transform_4, window_bounds = array<i64: 1, 32>}, {pipeline_mode = #tpu.pipeline_mode<synchronous>, transform_indices = @transform_5, window_bounds = array<i64: 32, 32>}, {pipeline_mode = #tpu.pipeline_mode<synchronous>, transform_indices = @transform_6, window_bounds = array<i64: 1, 32>}, {pipeline_mode = #tpu.pipeline_mode<synchronous>, transform_indices = @transform_7, window_bounds = array<i64: 1, 32>}, {pipeline_mode = #tpu.pipeline_mode<synchronous>, transform_indices = @transform_8, window_bounds = array<i64: 1, 32>}, {transform_indices = @transform_9, window_bounds = array<i64: 1, 8, 32>}]} {
    %c0 = arith.constant 0 : index
    %c0_0 = arith.constant 0 : index
    %c0_1 = arith.constant 0 : index
    %0 = vector.load %arg1[%c0, %c0_0, %c0_1] : memref<1x8x32xf32, #tpu.memory_space<vmem>>, vector<1x8x32xf32>
    %1 = vector.shape_cast %0 : vector<1x8x32xf32> to vector<8x32xf32>
    %c0_2 = arith.constant 0 : index
    %c0_3 = arith.constant 0 : index
    %2 = vector.load %arg2[%c0_2, %c0_3] : memref<32x768xf32, #tpu.memory_space<vmem>>, vector<32x768xf32>
    %cst = arith.constant dense<0.000000e+00> : vector<8x768xf32>
    %3 = tpu.matmul %1, %2, %cst {dimension_numbers = #tpu.dot_dimension_numbers<[1], [0], [0], [1], [0, 0, 1, 1], [], []>} : vector<8x32xf32>, vector<32x768xf32>, vector<8x768xf32> -> vector<8x768xf32>
    %c0_4 = arith.constant 0 : index
    %c0_5 = arith.constant 0 : index
    %4 = vector.load %arg3[%c0_4, %c0_5] : memref<1x768xf32, #tpu.memory_space<vmem>>, vector<1x768xf32>
    %5 = vector.shape_cast %4 : vector<1x768xf32> to vector<768xf32>
    %6 = vector.shape_cast %5 : vector<768xf32> to vector<1x768xf32>
    %7 = vector.broadcast %6 : vector<1x768xf32> to vector<8x768xf32>
    %8 = arith.addf %3, %7 : vector<8x768xf32>
    %c0_6 = arith.constant 0 : index
    %c0_7 = arith.constant 0 : index
    %9 = vector.load %arg8[%c0_6, %c0_7] : memref<1x32xf32, #tpu.memory_space<vmem>>, vector<1x32xf32>
    %10 = vector.shape_cast %9 : vector<1x32xf32> to vector<32xf32>
    %c0_8 = arith.constant 0 : index
    %c0_9 = arith.constant 0 : index
    %11 = vector.load %arg9[%c0_8, %c0_9] : memref<1x32xf32, #tpu.memory_space<vmem>>, vector<1x32xf32>
    %12 = vector.shape_cast %11 : vector<1x32xf32> to vector<32xf32>
    %13 = vector.extract_strided_slice %8 {offsets = [0, 0], sizes = [8, 32], strides = [1, 1]} : vector<8x768xf32> to vector<8x32xf32>
    %14 = vector.extract_strided_slice %8 {offsets = [0, 256], sizes = [8, 32], strides = [1, 1]} : vector<8x768xf32> to vector<8x32xf32>
    %15 = vector.extract_strided_slice %8 {offsets = [0, 512], sizes = [8, 32], strides = [1, 1]} : vector<8x768xf32> to vector<8x32xf32>
    %cst_10 = arith.constant dense<0.000000e+00> : vector<8x8xf32>
    %16 = tpu.matmul %13, %14, %cst_10 {dimension_numbers = #tpu.dot_dimension_numbers<[1], [1], [0], [0], [0, 0, 1, 0], [], []>} : vector<8x32xf32>, vector<8x32xf32>, vector<8x8xf32> -> vector<8x8xf32>
    %cst_11 = arith.constant dense<0xFF800000> : vector<8xf32>
    %17 = vector.multi_reduction <maximumf>, %16, %cst_11 [1] : vector<8x8xf32> to vector<8xf32>
    %18 = vector.shape_cast %17 : vector<8xf32> to vector<8x1xf32>
    %19 = vector.broadcast %18 : vector<8x1xf32> to vector<8x8xf32>
    %20 = arith.subf %16, %19 : vector<8x8xf32>
    %21 = math.exp %20 : vector<8x8xf32>
    %cst_12 = arith.constant dense<0.000000e+00> : vector<8xf32>
    %22 = vector.multi_reduction <add>, %21, %cst_12 [1] : vector<8x8xf32> to vector<8xf32>
    %23 = vector.shape_cast %22 : vector<8xf32> to vector<8x1xf32>
    %24 = tpu.reciprocal %23 {approx = true} : vector<8x1xf32> -> vector<8x1xf32>
    %25 = vector.broadcast %24 : vector<8x1xf32> to vector<8x8xf32>
    %26 = arith.mulf %21, %25 : vector<8x8xf32>
    %cst_13 = arith.constant dense<0.000000e+00> : vector<8x32xf32>
    %27 = tpu.matmul %26, %15, %cst_13 {dimension_numbers = #tpu.dot_dimension_numbers<[1], [0], [0], [1], [0, 0, 1, 1], [], []>} : vector<8x8xf32>, vector<8x32xf32>, vector<8x32xf32> -> vector<8x32xf32>
    %c0_14 = arith.constant 0 : index
    %c0_15 = arith.constant 0 : index
    %c0_16 = arith.constant 0 : index
    %28 = vector.load %arg4[%c0_14, %c0_15, %c0_16] : memref<8x32x32xf32, #tpu.memory_space<vmem>>, vector<1x32x32xf32>
    %29 = vector.shape_cast %28 : vector<1x32x32xf32> to vector<32x32xf32>
    %cst_17 = arith.constant dense<0.000000e+00> : vector<8x32xf32>
    %30 = tpu.matmul %27, %29, %cst_17 {dimension_numbers = #tpu.dot_dimension_numbers<[1], [0], [0], [1], [0, 0, 1, 1], [], []>} : vector<8x32xf32>, vector<32x32xf32>, vector<8x32xf32> -> vector<8x32xf32>
    %31 = vector.extract_strided_slice %8 {offsets = [0, 32], sizes = [8, 32], strides = [1, 1]} : vector<8x768xf32> to vector<8x32xf32>
    %32 = vector.extract_strided_slice %8 {offsets = [0, 288], sizes = [8, 32], strides = [1, 1]} : vector<8x768xf32> to vector<8x32xf32>
    %33 = vector.extract_strided_slice %8 {offsets = [0, 544], sizes = [8, 32], strides = [1, 1]} : vector<8x768xf32> to vector<8x32xf32>
    %cst_18 = arith.constant dense<0.000000e+00> : vector<8x8xf32>
    %34 = tpu.matmul %31, %32, %cst_18 {dimension_numbers = #tpu.dot_dimension_numbers<[1], [1], [0], [0], [0, 0, 1, 0], [], []>} : vector<8x32xf32>, vector<8x32xf32>, vector<8x8xf32> -> vector<8x8xf32>
    %cst_19 = arith.constant dense<0xFF800000> : vector<8xf32>
    %35 = vector.multi_reduction <maximumf>, %34, %cst_19 [1] : vector<8x8xf32> to vector<8xf32>
    %36 = vector.shape_cast %35 : vector<8xf32> to vector<8x1xf32>
    %37 = vector.broadcast %36 : vector<8x1xf32> to vector<8x8xf32>
    %38 = arith.subf %34, %37 : vector<8x8xf32>
    %39 = math.exp %38 : vector<8x8xf32>
    %cst_20 = arith.constant dense<0.000000e+00> : vector<8xf32>
    %40 = vector.multi_reduction <add>, %39, %cst_20 [1] : vector<8x8xf32> to vector<8xf32>
    %41 = vector.shape_cast %40 : vector<8xf32> to vector<8x1xf32>
    %42 = tpu.reciprocal %41 {approx = true} : vector<8x1xf32> -> vector<8x1xf32>
    %43 = vector.broadcast %42 : vector<8x1xf32> to vector<8x8xf32>
    %44 = arith.mulf %39, %43 : vector<8x8xf32>
    %cst_21 = arith.constant dense<0.000000e+00> : vector<8x32xf32>
    %45 = tpu.matmul %44, %33, %cst_21 {dimension_numbers = #tpu.dot_dimension_numbers<[1], [0], [0], [1], [0, 0, 1, 1], [], []>} : vector<8x8xf32>, vector<8x32xf32>, vector<8x32xf32> -> vector<8x32xf32>
    %c1 = arith.constant 1 : index
    %c0_22 = arith.constant 0 : index
    %c0_23 = arith.constant 0 : index
    %46 = vector.load %arg4[%c1, %c0_22, %c0_23] : memref<8x32x32xf32, #tpu.memory_space<vmem>>, vector<1x32x32xf32>
    %47 = vector.shape_cast %46 : vector<1x32x32xf32> to vector<32x32xf32>
    %cst_24 = arith.constant dense<0.000000e+00> : vector<8x32xf32>
    %48 = tpu.matmul %45, %47, %cst_24 {dimension_numbers = #tpu.dot_dimension_numbers<[1], [0], [0], [1], [0, 0, 1, 1], [], []>} : vector<8x32xf32>, vector<32x32xf32>, vector<8x32xf32> -> vector<8x32xf32>
    %49 = arith.addf %30, %48 : vector<8x32xf32>
    %50 = vector.extract_strided_slice %8 {offsets = [0, 64], sizes = [8, 32], strides = [1, 1]} : vector<8x768xf32> to vector<8x32xf32>
    %51 = vector.extract_strided_slice %8 {offsets = [0, 320], sizes = [8, 32], strides = [1, 1]} : vector<8x768xf32> to vector<8x32xf32>
    %52 = vector.extract_strided_slice %8 {offsets = [0, 576], sizes = [8, 32], strides = [1, 1]} : vector<8x768xf32> to vector<8x32xf32>
    %cst_25 = arith.constant dense<0.000000e+00> : vector<8x8xf32>
    %53 = tpu.matmul %50, %51, %cst_25 {dimension_numbers = #tpu.dot_dimension_numbers<[1], [1], [0], [0], [0, 0, 1, 0], [], []>} : vector<8x32xf32>, vector<8x32xf32>, vector<8x8xf32> -> vector<8x8xf32>
    %cst_26 = arith.constant dense<0xFF800000> : vector<8xf32>
    %54 = vector.multi_reduction <maximumf>, %53, %cst_26 [1] : vector<8x8xf32> to vector<8xf32>
    %55 = vector.shape_cast %54 : vector<8xf32> to vector<8x1xf32>
    %56 = vector.broadcast %55 : vector<8x1xf32> to vector<8x8xf32>
    %57 = arith.subf %53, %56 : vector<8x8xf32>
    %58 = math.exp %57 : vector<8x8xf32>
    %cst_27 = arith.constant dense<0.000000e+00> : vector<8xf32>
    %59 = vector.multi_reduction <add>, %58, %cst_27 [1] : vector<8x8xf32> to vector<8xf32>
    %60 = vector.shape_cast %59 : vector<8xf32> to vector<8x1xf32>
    %61 = tpu.reciprocal %60 {approx = true} : vector<8x1xf32> -> vector<8x1xf32>
    %62 = vector.broadcast %61 : vector<8x1xf32> to vector<8x8xf32>
    %63 = arith.mulf %58, %62 : vector<8x8xf32>
    %cst_28 = arith.constant dense<0.000000e+00> : vector<8x32xf32>
    %64 = tpu.matmul %63, %52, %cst_28 {dimension_numbers = #tpu.dot_dimension_numbers<[1], [0], [0], [1], [0, 0, 1, 1], [], []>} : vector<8x8xf32>, vector<8x32xf32>, vector<8x32xf32> -> vector<8x32xf32>
    %c2 = arith.constant 2 : index
    %c0_29 = arith.constant 0 : index
    %c0_30 = arith.constant 0 : index
    %65 = vector.load %arg4[%c2, %c0_29, %c0_30] : memref<8x32x32xf32, #tpu.memory_space<vmem>>, vector<1x32x32xf32>
    %66 = vector.shape_cast %65 : vector<1x32x32xf32> to vector<32x32xf32>
    %cst_31 = arith.constant dense<0.000000e+00> : vector<8x32xf32>
    %67 = tpu.matmul %64, %66, %cst_31 {dimension_numbers = #tpu.dot_dimension_numbers<[1], [0], [0], [1], [0, 0, 1, 1], [], []>} : vector<8x32xf32>, vector<32x32xf32>, vector<8x32xf32> -> vector<8x32xf32>
    %68 = arith.addf %49, %67 : vector<8x32xf32>
    %69 = vector.extract_strided_slice %8 {offsets = [0, 96], sizes = [8, 32], strides = [1, 1]} : vector<8x768xf32> to vector<8x32xf32>
    %70 = vector.extract_strided_slice %8 {offsets = [0, 352], sizes = [8, 32], strides = [1, 1]} : vector<8x768xf32> to vector<8x32xf32>
    %71 = vector.extract_strided_slice %8 {offsets = [0, 608], sizes = [8, 32], strides = [1, 1]} : vector<8x768xf32> to vector<8x32xf32>
    %cst_32 = arith.constant dense<0.000000e+00> : vector<8x8xf32>
    %72 = tpu.matmul %69, %70, %cst_32 {dimension_numbers = #tpu.dot_dimension_numbers<[1], [1], [0], [0], [0, 0, 1, 0], [], []>} : vector<8x32xf32>, vector<8x32xf32>, vector<8x8xf32> -> vector<8x8xf32>
    %cst_33 = arith.constant dense<0xFF800000> : vector<8xf32>
    %73 = vector.multi_reduction <maximumf>, %72, %cst_33 [1] : vector<8x8xf32> to vector<8xf32>
    %74 = vector.shape_cast %73 : vector<8xf32> to vector<8x1xf32>
    %75 = vector.broadcast %74 : vector<8x1xf32> to vector<8x8xf32>
    %76 = arith.subf %72, %75 : vector<8x8xf32>
    %77 = math.exp %76 : vector<8x8xf32>
    %cst_34 = arith.constant dense<0.000000e+00> : vector<8xf32>
    %78 = vector.multi_reduction <add>, %77, %cst_34 [1] : vector<8x8xf32> to vector<8xf32>
    %79 = vector.shape_cast %78 : vector<8xf32> to vector<8x1xf32>
    %80 = tpu.reciprocal %79 {approx = true} : vector<8x1xf32> -> vector<8x1xf32>
    %81 = vector.broadcast %80 : vector<8x1xf32> to vector<8x8xf32>
    %82 = arith.mulf %77, %81 : vector<8x8xf32>
    %cst_35 = arith.constant dense<0.000000e+00> : vector<8x32xf32>
    %83 = tpu.matmul %82, %71, %cst_35 {dimension_numbers = #tpu.dot_dimension_numbers<[1], [0], [0], [1], [0, 0, 1, 1], [], []>} : vector<8x8xf32>, vector<8x32xf32>, vector<8x32xf32> -> vector<8x32xf32>
    %c3 = arith.constant 3 : index
    %c0_36 = arith.constant 0 : index
    %c0_37 = arith.constant 0 : index
    %84 = vector.load %arg4[%c3, %c0_36, %c0_37] : memref<8x32x32xf32, #tpu.memory_space<vmem>>, vector<1x32x32xf32>
    %85 = vector.shape_cast %84 : vector<1x32x32xf32> to vector<32x32xf32>
    %cst_38 = arith.constant dense<0.000000e+00> : vector<8x32xf32>
    %86 = tpu.matmul %83, %85, %cst_38 {dimension_numbers = #tpu.dot_dimension_numbers<[1], [0], [0], [1], [0, 0, 1, 1], [], []>} : vector<8x32xf32>, vector<32x32xf32>, vector<8x32xf32> -> vector<8x32xf32>
    %87 = arith.addf %68, %86 : vector<8x32xf32>
    %88 = vector.extract_strided_slice %8 {offsets = [0, 128], sizes = [8, 32], strides = [1, 1]} : vector<8x768xf32> to vector<8x32xf32>
    %89 = vector.extract_strided_slice %8 {offsets = [0, 384], sizes = [8, 32], strides = [1, 1]} : vector<8x768xf32> to vector<8x32xf32>
    %90 = vector.extract_strided_slice %8 {offsets = [0, 640], sizes = [8, 32], strides = [1, 1]} : vector<8x768xf32> to vector<8x32xf32>
    %cst_39 = arith.constant dense<0.000000e+00> : vector<8x8xf32>
    %91 = tpu.matmul %88, %89, %cst_39 {dimension_numbers = #tpu.dot_dimension_numbers<[1], [1], [0], [0], [0, 0, 1, 0], [], []>} : vector<8x32xf32>, vector<8x32xf32>, vector<8x8xf32> -> vector<8x8xf32>
    %cst_40 = arith.constant dense<0xFF800000> : vector<8xf32>
    %92 = vector.multi_reduction <maximumf>, %91, %cst_40 [1] : vector<8x8xf32> to vector<8xf32>
    %93 = vector.shape_cast %92 : vector<8xf32> to vector<8x1xf32>
    %94 = vector.broadcast %93 : vector<8x1xf32> to vector<8x8xf32>
    %95 = arith.subf %91, %94 : vector<8x8xf32>
    %96 = math.exp %95 : vector<8x8xf32>
    %cst_41 = arith.constant dense<0.000000e+00> : vector<8xf32>
    %97 = vector.multi_reduction <add>, %96, %cst_41 [1] : vector<8x8xf32> to vector<8xf32>
    %98 = vector.shape_cast %97 : vector<8xf32> to vector<8x1xf32>
    %99 = tpu.reciprocal %98 {approx = true} : vector<8x1xf32> -> vector<8x1xf32>
    %100 = vector.broadcast %99 : vector<8x1xf32> to vector<8x8xf32>
    %101 = arith.mulf %96, %100 : vector<8x8xf32>
    %cst_42 = arith.constant dense<0.000000e+00> : vector<8x32xf32>
    %102 = tpu.matmul %101, %90, %cst_42 {dimension_numbers = #tpu.dot_dimension_numbers<[1], [0], [0], [1], [0, 0, 1, 1], [], []>} : vector<8x8xf32>, vector<8x32xf32>, vector<8x32xf32> -> vector<8x32xf32>
    %c4 = arith.constant 4 : index
    %c0_43 = arith.constant 0 : index
    %c0_44 = arith.constant 0 : index
    %103 = vector.load %arg4[%c4, %c0_43, %c0_44] : memref<8x32x32xf32, #tpu.memory_space<vmem>>, vector<1x32x32xf32>
    %104 = vector.shape_cast %103 : vector<1x32x32xf32> to vector<32x32xf32>
    %cst_45 = arith.constant dense<0.000000e+00> : vector<8x32xf32>
    %105 = tpu.matmul %102, %104, %cst_45 {dimension_numbers = #tpu.dot_dimension_numbers<[1], [0], [0], [1], [0, 0, 1, 1], [], []>} : vector<8x32xf32>, vector<32x32xf32>, vector<8x32xf32> -> vector<8x32xf32>
    %106 = arith.addf %87, %105 : vector<8x32xf32>
    %107 = vector.extract_strided_slice %8 {offsets = [0, 160], sizes = [8, 32], strides = [1, 1]} : vector<8x768xf32> to vector<8x32xf32>
    %108 = vector.extract_strided_slice %8 {offsets = [0, 416], sizes = [8, 32], strides = [1, 1]} : vector<8x768xf32> to vector<8x32xf32>
    %109 = vector.extract_strided_slice %8 {offsets = [0, 672], sizes = [8, 32], strides = [1, 1]} : vector<8x768xf32> to vector<8x32xf32>
    %cst_46 = arith.constant dense<0.000000e+00> : vector<8x8xf32>
    %110 = tpu.matmul %107, %108, %cst_46 {dimension_numbers = #tpu.dot_dimension_numbers<[1], [1], [0], [0], [0, 0, 1, 0], [], []>} : vector<8x32xf32>, vector<8x32xf32>, vector<8x8xf32> -> vector<8x8xf32>
    %cst_47 = arith.constant dense<0xFF800000> : vector<8xf32>
    %111 = vector.multi_reduction <maximumf>, %110, %cst_47 [1] : vector<8x8xf32> to vector<8xf32>
    %112 = vector.shape_cast %111 : vector<8xf32> to vector<8x1xf32>
    %113 = vector.broadcast %112 : vector<8x1xf32> to vector<8x8xf32>
    %114 = arith.subf %110, %113 : vector<8x8xf32>
    %115 = math.exp %114 : vector<8x8xf32>
    %cst_48 = arith.constant dense<0.000000e+00> : vector<8xf32>
    %116 = vector.multi_reduction <add>, %115, %cst_48 [1] : vector<8x8xf32> to vector<8xf32>
    %117 = vector.shape_cast %116 : vector<8xf32> to vector<8x1xf32>
    %118 = tpu.reciprocal %117 {approx = true} : vector<8x1xf32> -> vector<8x1xf32>
    %119 = vector.broadcast %118 : vector<8x1xf32> to vector<8x8xf32>
    %120 = arith.mulf %115, %119 : vector<8x8xf32>
    %cst_49 = arith.constant dense<0.000000e+00> : vector<8x32xf32>
    %121 = tpu.matmul %120, %109, %cst_49 {dimension_numbers = #tpu.dot_dimension_numbers<[1], [0], [0], [1], [0, 0, 1, 1], [], []>} : vector<8x8xf32>, vector<8x32xf32>, vector<8x32xf32> -> vector<8x32xf32>
    %c5 = arith.constant 5 : index
    %c0_50 = arith.constant 0 : index
    %c0_51 = arith.constant 0 : index
    %122 = vector.load %arg4[%c5, %c0_50, %c0_51] : memref<8x32x32xf32, #tpu.memory_space<vmem>>, vector<1x32x32xf32>
    %123 = vector.shape_cast %122 : vector<1x32x32xf32> to vector<32x32xf32>
    %cst_52 = arith.constant dense<0.000000e+00> : vector<8x32xf32>
    %124 = tpu.matmul %121, %123, %cst_52 {dimension_numbers = #tpu.dot_dimension_numbers<[1], [0], [0], [1], [0, 0, 1, 1], [], []>} : vector<8x32xf32>, vector<32x32xf32>, vector<8x32xf32> -> vector<8x32xf32>
    %125 = arith.addf %106, %124 : vector<8x32xf32>
    %126 = vector.extract_strided_slice %8 {offsets = [0, 192], sizes = [8, 32], strides = [1, 1]} : vector<8x768xf32> to vector<8x32xf32>
    %127 = vector.extract_strided_slice %8 {offsets = [0, 448], sizes = [8, 32], strides = [1, 1]} : vector<8x768xf32> to vector<8x32xf32>
    %128 = vector.extract_strided_slice %8 {offsets = [0, 704], sizes = [8, 32], strides = [1, 1]} : vector<8x768xf32> to vector<8x32xf32>
    %cst_53 = arith.constant dense<0.000000e+00> : vector<8x8xf32>
    %129 = tpu.matmul %126, %127, %cst_53 {dimension_numbers = #tpu.dot_dimension_numbers<[1], [1], [0], [0], [0, 0, 1, 0], [], []>} : vector<8x32xf32>, vector<8x32xf32>, vector<8x8xf32> -> vector<8x8xf32>
    %cst_54 = arith.constant dense<0xFF800000> : vector<8xf32>
    %130 = vector.multi_reduction <maximumf>, %129, %cst_54 [1] : vector<8x8xf32> to vector<8xf32>
    %131 = vector.shape_cast %130 : vector<8xf32> to vector<8x1xf32>
    %132 = vector.broadcast %131 : vector<8x1xf32> to vector<8x8xf32>
    %133 = arith.subf %129, %132 : vector<8x8xf32>
    %134 = math.exp %133 : vector<8x8xf32>
    %cst_55 = arith.constant dense<0.000000e+00> : vector<8xf32>
    %135 = vector.multi_reduction <add>, %134, %cst_55 [1] : vector<8x8xf32> to vector<8xf32>
    %136 = vector.shape_cast %135 : vector<8xf32> to vector<8x1xf32>
    %137 = tpu.reciprocal %136 {approx = true} : vector<8x1xf32> -> vector<8x1xf32>
    %138 = vector.broadcast %137 : vector<8x1xf32> to vector<8x8xf32>
    %139 = arith.mulf %134, %138 : vector<8x8xf32>
    %cst_56 = arith.constant dense<0.000000e+00> : vector<8x32xf32>
    %140 = tpu.matmul %139, %128, %cst_56 {dimension_numbers = #tpu.dot_dimension_numbers<[1], [0], [0], [1], [0, 0, 1, 1], [], []>} : vector<8x8xf32>, vector<8x32xf32>, vector<8x32xf32> -> vector<8x32xf32>
    %c6 = arith.constant 6 : index
    %c0_57 = arith.constant 0 : index
    %c0_58 = arith.constant 0 : index
    %141 = vector.load %arg4[%c6, %c0_57, %c0_58] : memref<8x32x32xf32, #tpu.memory_space<vmem>>, vector<1x32x32xf32>
    %142 = vector.shape_cast %141 : vector<1x32x32xf32> to vector<32x32xf32>
    %cst_59 = arith.constant dense<0.000000e+00> : vector<8x32xf32>
    %143 = tpu.matmul %140, %142, %cst_59 {dimension_numbers = #tpu.dot_dimension_numbers<[1], [0], [0], [1], [0, 0, 1, 1], [], []>} : vector<8x32xf32>, vector<32x32xf32>, vector<8x32xf32> -> vector<8x32xf32>
    %144 = arith.addf %125, %143 : vector<8x32xf32>
    %145 = vector.extract_strided_slice %8 {offsets = [0, 224], sizes = [8, 32], strides = [1, 1]} : vector<8x768xf32> to vector<8x32xf32>
    %146 = vector.extract_strided_slice %8 {offsets = [0, 480], sizes = [8, 32], strides = [1, 1]} : vector<8x768xf32> to vector<8x32xf32>
    %147 = vector.extract_strided_slice %8 {offsets = [0, 736], sizes = [8, 32], strides = [1, 1]} : vector<8x768xf32> to vector<8x32xf32>
    %cst_60 = arith.constant dense<0.000000e+00> : vector<8x8xf32>
    %148 = tpu.matmul %145, %146, %cst_60 {dimension_numbers = #tpu.dot_dimension_numbers<[1], [1], [0], [0], [0, 0, 1, 0], [], []>} : vector<8x32xf32>, vector<8x32xf32>, vector<8x8xf32> -> vector<8x8xf32>
    %cst_61 = arith.constant dense<0xFF800000> : vector<8xf32>
    %149 = vector.multi_reduction <maximumf>, %148, %cst_61 [1] : vector<8x8xf32> to vector<8xf32>
    %150 = vector.shape_cast %149 : vector<8xf32> to vector<8x1xf32>
    %151 = vector.broadcast %150 : vector<8x1xf32> to vector<8x8xf32>
    %152 = arith.subf %148, %151 : vector<8x8xf32>
    %153 = math.exp %152 : vector<8x8xf32>
    %cst_62 = arith.constant dense<0.000000e+00> : vector<8xf32>
    %154 = vector.multi_reduction <add>, %153, %cst_62 [1] : vector<8x8xf32> to vector<8xf32>
    %155 = vector.shape_cast %154 : vector<8xf32> to vector<8x1xf32>
    %156 = tpu.reciprocal %155 {approx = true} : vector<8x1xf32> -> vector<8x1xf32>
    %157 = vector.broadcast %156 : vector<8x1xf32> to vector<8x8xf32>
    %158 = arith.mulf %153, %157 : vector<8x8xf32>
    %cst_63 = arith.constant dense<0.000000e+00> : vector<8x32xf32>
    %159 = tpu.matmul %158, %147, %cst_63 {dimension_numbers = #tpu.dot_dimension_numbers<[1], [0], [0], [1], [0, 0, 1, 1], [], []>} : vector<8x8xf32>, vector<8x32xf32>, vector<8x32xf32> -> vector<8x32xf32>
    %c7 = arith.constant 7 : index
    %c0_64 = arith.constant 0 : index
    %c0_65 = arith.constant 0 : index
    %160 = vector.load %arg4[%c7, %c0_64, %c0_65] : memref<8x32x32xf32, #tpu.memory_space<vmem>>, vector<1x32x32xf32>
    %161 = vector.shape_cast %160 : vector<1x32x32xf32> to vector<32x32xf32>
    %cst_66 = arith.constant dense<0.000000e+00> : vector<8x32xf32>
    %162 = tpu.matmul %159, %161, %cst_66 {dimension_numbers = #tpu.dot_dimension_numbers<[1], [0], [0], [1], [0, 0, 1, 1], [], []>} : vector<8x32xf32>, vector<32x32xf32>, vector<8x32xf32> -> vector<8x32xf32>
    %163 = arith.addf %144, %162 : vector<8x32xf32>
    %c0_67 = arith.constant 0 : index
    %c0_68 = arith.constant 0 : index
    %164 = vector.load %arg5[%c0_67, %c0_68] : memref<1x32xf32, #tpu.memory_space<vmem>>, vector<1x32xf32>
    %165 = vector.shape_cast %164 : vector<1x32xf32> to vector<32xf32>
    %166 = vector.shape_cast %165 : vector<32xf32> to vector<1x32xf32>
    %167 = vector.broadcast %166 : vector<1x32xf32> to vector<8x32xf32>
    %168 = arith.addf %163, %167 : vector<8x32xf32>
    %169 = arith.addf %1, %168 : vector<8x32xf32>
    %cst_69 = arith.constant dense<0.000000e+00> : vector<8xf32>
    %170 = vector.multi_reduction <add>, %169, %cst_69 [1] : vector<8x32xf32> to vector<8xf32>
    %171 = vector.shape_cast %170 : vector<8xf32> to vector<8x1xf32>
    %cst_70 = arith.constant 3.200000e+01 : f32
    %172 = vector.broadcast %cst_70 : f32 to vector<8x1xf32>
    %173 = arith.divf %171, %172 : vector<8x1xf32>
    %174 = vector.broadcast %173 : vector<8x1xf32> to vector<8x32xf32>
    %175 = arith.subf %169, %174 : vector<8x32xf32>
    %176 = arith.mulf %175, %175 : vector<8x32xf32>
    %cst_71 = arith.constant dense<0.000000e+00> : vector<8xf32>
    %177 = vector.multi_reduction <add>, %176, %cst_71 [1] : vector<8x32xf32> to vector<8xf32>
    %178 = vector.shape_cast %177 : vector<8xf32> to vector<8x1xf32>
    %cst_72 = arith.constant 3.200000e+01 : f32
    %179 = vector.broadcast %cst_72 : f32 to vector<8x1xf32>
    %180 = arith.divf %178, %179 : vector<8x1xf32>
    %181 = vector.broadcast %173 : vector<8x1xf32> to vector<8x32xf32>
    %182 = arith.subf %169, %181 : vector<8x32xf32>
    %cst_73 = arith.constant 9.99999974E-6 : f32
    %183 = vector.broadcast %cst_73 : f32 to vector<8x1xf32>
    %184 = arith.addf %180, %183 : vector<8x1xf32>
    %185 = math.rsqrt %184 : vector<8x1xf32>
    %186 = vector.broadcast %185 : vector<8x1xf32> to vector<8x32xf32>
    %187 = arith.mulf %182, %186 : vector<8x32xf32>
    %188 = vector.shape_cast %10 : vector<32xf32> to vector<1x32xf32>
    %189 = vector.broadcast %188 : vector<1x32xf32> to vector<8x32xf32>
    %190 = arith.mulf %187, %189 : vector<8x32xf32>
    %191 = vector.shape_cast %12 : vector<32xf32> to vector<1x32xf32>
    %192 = vector.broadcast %191 : vector<1x32xf32> to vector<8x32xf32>
    %193 = arith.addf %190, %192 : vector<8x32xf32>
    %c0_74 = arith.constant 0 : index
    %c0_75 = arith.constant 0 : index
    %194 = vector.load %arg6[%c0_74, %c0_75] : memref<32x32xf32, #tpu.memory_space<vmem>>, vector<32x32xf32>
    %cst_76 = arith.constant dense<0.000000e+00> : vector<8x32xf32>
    %195 = tpu.matmul %193, %194, %cst_76 {dimension_numbers = #tpu.dot_dimension_numbers<[1], [0], [0], [1], [0, 0, 1, 1], [], []>} : vector<8x32xf32>, vector<32x32xf32>, vector<8x32xf32> -> vector<8x32xf32>
    %c0_77 = arith.constant 0 : index
    %c0_78 = arith.constant 0 : index
    %196 = vector.load %arg7[%c0_77, %c0_78] : memref<1x32xf32, #tpu.memory_space<vmem>>, vector<1x32xf32>
    %197 = vector.shape_cast %196 : vector<1x32xf32> to vector<32xf32>
    %198 = vector.shape_cast %197 : vector<32xf32> to vector<1x32xf32>
    %199 = vector.broadcast %198 : vector<1x32xf32> to vector<8x32xf32>
    %200 = arith.addf %195, %199 : vector<8x32xf32>
    %201 = arith.addf %193, %200 : vector<8x32xf32>
    %cst_79 = arith.constant dense<0.000000e+00> : vector<8xf32>
    %202 = vector.multi_reduction <add>, %201, %cst_79 [1] : vector<8x32xf32> to vector<8xf32>
    %203 = vector.shape_cast %202 : vector<8xf32> to vector<8x1xf32>
    %cst_80 = arith.constant 3.200000e+01 : f32
    %204 = vector.broadcast %cst_80 : f32 to vector<8x1xf32>
    %205 = arith.divf %203, %204 : vector<8x1xf32>
    %206 = vector.broadcast %205 : vector<8x1xf32> to vector<8x32xf32>
    %207 = arith.subf %201, %206 : vector<8x32xf32>
    %208 = arith.mulf %207, %207 : vector<8x32xf32>
    %cst_81 = arith.constant dense<0.000000e+00> : vector<8xf32>
    %209 = vector.multi_reduction <add>, %208, %cst_81 [1] : vector<8x32xf32> to vector<8xf32>
    %210 = vector.shape_cast %209 : vector<8xf32> to vector<8x1xf32>
    %cst_82 = arith.constant 3.200000e+01 : f32
    %211 = vector.broadcast %cst_82 : f32 to vector<8x1xf32>
    %212 = arith.divf %210, %211 : vector<8x1xf32>
    %213 = vector.broadcast %205 : vector<8x1xf32> to vector<8x32xf32>
    %214 = arith.subf %201, %213 : vector<8x32xf32>
    %cst_83 = arith.constant 9.99999974E-6 : f32
    %215 = vector.broadcast %cst_83 : f32 to vector<8x1xf32>
    %216 = arith.addf %212, %215 : vector<8x1xf32>
    %217 = math.rsqrt %216 : vector<8x1xf32>
    %218 = vector.broadcast %217 : vector<8x1xf32> to vector<8x32xf32>
    %219 = arith.mulf %214, %218 : vector<8x32xf32>
    %220 = vector.shape_cast %10 : vector<32xf32> to vector<1x32xf32>
    %221 = vector.broadcast %220 : vector<1x32xf32> to vector<8x32xf32>
    %222 = arith.mulf %219, %221 : vector<8x32xf32>
    %223 = vector.shape_cast %12 : vector<32xf32> to vector<1x32xf32>
    %224 = vector.broadcast %223 : vector<1x32xf32> to vector<8x32xf32>
    %225 = arith.addf %222, %224 : vector<8x32xf32>
    %c0_84 = arith.constant 0 : index
    %c0_85 = arith.constant 0 : index
    %c0_86 = arith.constant 0 : index
    %226 = vector.load %arg10[%c0_84, %c0_85, %c0_86] : memref<1x8x32xf32, #tpu.memory_space<vmem>>, vector<1x8x32xf32>
    %227 = vector.shape_cast %226 : vector<1x8x32xf32> to vector<8x32xf32>
    %228 = vector.shape_cast %225 : vector<8x32xf32> to vector<1x8x32xf32>
    tpu.vector_store %arg10[%c0_84, %c0_85, %c0_86], %228 {strides = array<i32>} : memref<1x8x32xf32, #tpu.memory_space<vmem>>, vector<1x8x32xf32>,
    return
  }
  func.func @transform_0(%arg0: i32) -> (i32, i32, i32) {
    %c0_i32 = arith.constant 0 : i32
    %c0_i32_0 = arith.constant 0 : i32
    %c0_i32_1 = arith.constant 0 : i32
    return %arg0, %c0_i32, %c0_i32_0 : i32, i32, i32
  }
  func.func @transform_1(%arg0: i32) -> (i32, i32) {
    %c0_i32 = arith.constant 0 : i32
    %c0_i32_0 = arith.constant 0 : i32
    %c0_i32_1 = arith.constant 0 : i32
    return %c0_i32, %c0_i32_0 : i32, i32
  }
  func.func @transform_2(%arg0: i32) -> (i32, i32) {
    %c0_i32 = arith.constant 0 : i32
    %c0_i32_0 = arith.constant 0 : i32
    %c0_i32_1 = arith.constant 0 : i32
    return %c0_i32, %c0_i32_0 : i32, i32
  }
  func.func @transform_3(%arg0: i32) -> (i32, i32, i32) {
    %c0_i32 = arith.constant 0 : i32
    %c0_i32_0 = arith.constant 0 : i32
    %c0_i32_1 = arith.constant 0 : i32
    %c0_i32_2 = arith.constant 0 : i32
    return %c0_i32, %c0_i32_0, %c0_i32_1 : i32, i32, i32
  }
  func.func @transform_4(%arg0: i32) -> (i32, i32) {
    %c0_i32 = arith.constant 0 : i32
    %c0_i32_0 = arith.constant 0 : i32
    %c0_i32_1 = arith.constant 0 : i32
    return %c0_i32, %c0_i32_0 : i32, i32
  }
  func.func @transform_5(%arg0: i32) -> (i32, i32) {
    %c0_i32 = arith.constant 0 : i32
    %c0_i32_0 = arith.constant 0 : i32
    %c0_i32_1 = arith.constant 0 : i32
    return %c0_i32, %c0_i32_0 : i32, i32
  }
  func.func @transform_6(%arg0: i32) -> (i32, i32) {
    %c0_i32 = arith.constant 0 : i32
    %c0_i32_0 = arith.constant 0 : i32
    %c0_i32_1 = arith.constant 0 : i32
    return %c0_i32, %c0_i32_0 : i32, i32
  }
  func.func @transform_7(%arg0: i32) -> (i32, i32) {
    %c0_i32 = arith.constant 0 : i32
    %c0_i32_0 = arith.constant 0 : i32
    %c0_i32_1 = arith.constant 0 : i32
    return %c0_i32, %c0_i32_0 : i32, i32
  }
  func.func @transform_8(%arg0: i32) -> (i32, i32) {
    %c0_i32 = arith.constant 0 : i32
    %c0_i32_0 = arith.constant 0 : i32
    %c0_i32_1 = arith.constant 0 : i32
    return %c0_i32, %c0_i32_0 : i32, i32
  }
  func.func @transform_9(%arg0: i32) -> (i32, i32, i32) {
    %c0_i32 = arith.constant 0 : i32
    %c0_i32_0 = arith.constant 0 : i32
    %c0_i32_1 = arith.constant 0 : i32
    return %arg0, %c0_i32, %c0_i32_0 : i32, i32, i32
  }
}

</mosaic_0001>

<bundles_post_ra>
// kernel: tpu_custom_call.1
= control target key start
LH: loop header
LB: loop body
LE: loop exit
PB: predicated region body
PF: predicated region fallthrough
CT: control target
= control target key end

     0   :  { %s4130_s0 = inlined_call_operand.hbm [shape: f32[2,8,32], index: 0, kind: input, shape index: {}]   ;;  %s4131_s1 = inlined_call_operand.hbm [shape: f32[32,768], index: 1, kind: input, shape index: {}]   ;;  %s4132_s2 = inlined_call_operand.vmem [shape: f32[1,768], index: 2, kind: input, shape index: {}]   ;;  %s4133_s3 = inlined_call_operand.hbm [shape: f32[8,32,32], index: 3, kind: input, shape index: {}]   ;;  %s4134_s4 = inlined_call_operand.vmem [shape: f32[1,32], index: 4, kind: input, shape index: {}]   ;;  %s4135_s5 = inlined_call_operand.hbm [shape: f32[32,32], index: 5, kind: input, shape index: {}]   ;;  %s4136_s6 = inlined_call_operand.vmem [shape: f32[1,32], index: 6, kind: input, shape index: {}]   ;;  %s4137_s7 = inlined_call_operand.vmem [shape: f32[1,32], index: 7, kind: input, shape index: {}]   ;;  %s4138_s8 = inlined_call_operand.vmem [shape: f32[1,32], index: 8, kind: input, shape index: {}]   ;;  %s4139_s9 = inlined_call_operand.hbm [shape: f32[2,8,32], index: 9, kind: output, shape index: {}]  }
   0x1   :  { %4146 = sst [smem:[#allocation17_spill]] %s4131_s1 }
   0x2   :  { %4147 = sst [smem:[#allocation18_spill]] %s4139_s9 }
   0x3   :  { %14 = vsyncpa [#allocation3], 0 }
   0x4   :  { %16 = vsyncpa [#allocation3 + $0x1], 0 }
   0x5   :  { %17 = vsyncpa [#allocation6], 0 }
   0x6   :  { %18 = vsyncpa [#allocation9], 0 }
   0x7   :  { %19 = vsyncpa [#allocation4], 0 }
   0x8   :  { %21 = vsyncpa [#allocation4 + $0x1], 0  ;;  %s3631_s30 = smov 0   ;;  %s3633_s10 = smov 0  }
   0x9   :  { %s3635_s11 = smov 0   ;;  %s3637_s12 = smov 0  }
   0xa LB: > { %4148 = sst [smem:[#allocation15_spill]] %s3552_s30  ;;  %s3652_s13 = sadd.s32 4294967295, %s3564_s12   ;;  %s3564_s12 = sphi %s3637_s12, %s4173_s12   ;;  %s3560_s11 = sphi %s3635_s11, %s4172_s11   ;;  %s3556_s10 = sphi %s3633_s10, %s4171_s10   ;;  %s3552_s30 = sphi %s3631_s30, %s4170_s30  }
   0xb   : > { %s2861_s14 = sadd.s32 4294967294, %s3564_s12   ;;  %p47_p0 = scmp.ne.s32.totalorder %s3556_s10, %s3552_s30 }
   0xc   : > { %p4140_p1 = scmp.eq.s32.totalorder %s3652_s13, 0  ;;  %p245_p3 = scmp.eq.s32.totalorder %s2861_s14, 1 }
   0xd   : > { %p2862_p5 = scmp.ge.s32.totalorder %s3564_s12, 1  ;;  %p252_p7 = scmp.lt.s32.totalorder %s3564_s12, 3 }
   0xe   : > { %p3661_p4 = por %p4140_p1, %p47_p0  ;;  %p3666_p6 = por %p245_p3, %p47_p0 }
   0xf   : > { %p3671_p8 = pnand %p2862_p5, %p252_p7  ;;  %s3566_s18 = smov [#allocation5]  }
  0x10   : > { %s4149_s15 = scalar_select %p3661_p4, 1, 0 }
  0x11   : > { %s4150_s16 = scalar_select %p3666_p6, 1, 0 }
  0x12   : > { %s4152_s17 = scalar_select %p3671_p8, 1, 0 }
  0x13   : > { %4151 = sst [smem:[#allocation16_spill]] %s4150_s16  ;;  %s264_s19 = sshll.u32 %s3566_s18, 4  ;;  %s3675_s19 = int_to_ptr.vmem [resolvable:$true] %s264_s19 }
  0x14   : > { %p3269_p9 = pneg %p3671_p8  ;;  %s3567_s21 = smov [#allocation7]  }
  0x15   : > { %s280_s22 = sshll.u32 %s3567_s21, 4  ;;  %s4154_s1 = sld [smem:[#allocation17_spill]]  ;;  %s3686_s22 = int_to_ptr.vmem [resolvable:$true] %s280_s22 }
  0x16   : > { %p3682_p11 = pnand %p3269_p9, %p4140_p1 }
  0x18   : > { %p3696_p13 = pneg %p3682_p11 }
  0x1b   : > { %s3376_s25 = scalar_lea.hbm %s4154_s1, 3072 }
  0x1c   : > { %p3377_p12 = scmp.ne.s32.totalorder %s4154_s1, %s3376_s25  ;;  %p3383_p5 = scmp.lt.u32.totalorder %s3376_s25, %s4154_s1 }
  0x1e   : > { %p3379_p0 = pnand %p3696_p13, %p3377_p12 }
  0x20   : > { %p3380_p3 = pneg %p3379_p0 }
  0x22   : > { %p3385_p7 = pnand %p3383_p5, %p3380_p3 }
  0x24   : > { %3388 = shalt.err (!%p3385_p7)
}
  0x25   : > { %s3389_s18 = scalar_lea.vmem %s3675_s19, 3072  ;;  %p3397_p2 = scmp.lt.s32.totalorder %s3675_s19, %s3675_s19 }
  0x26   : > { %p3390_p9 = scmp.ne.s32.totalorder %s3675_s19, %s3389_s18  ;;  %p3398_p6 = scmp.lt.s32.totalorder %s3389_s18, %s3389_s18 }
  0x28   : > { %p3392_p10 = pnand %p3390_p9, %p3696_p13  ;;  %p3399_p12 = por %p3398_p6, %p3397_p2 }
  0x2a   : > { %p3393_p1 = pneg %p3392_p10 }
  0x2c   : > { %p3400_p0 = pnand %p3399_p12, %p3393_p1 }
  0x2e   : > { %3403 = shalt.err (!%p3400_p0)
}
  0x2f   : > { %s3568_s21 = smov 768   ;;  %s3569_s23 = smov 48  }
  0x30   : > { %3272 = dma.hbm_to_vmem [thread:$0]  (!%p3682_p11), %s4154_s1, 3072, %s3675_s19, [#allocation6], %s3568_s21, %s3568_s21, %s3569_s23  }
  0x31   : > { %s3404_s29 = scalar_lea.hbm %s4133_s3, 4096 }
  0x32   : > { %p3405_p2 = scmp.ne.s32.totalorder %s4133_s3, %s3404_s29  ;;  %p3411_p10 = scmp.lt.u32.totalorder %s3404_s29, %s4133_s3 }
  0x34   : > { %p3407_p1 = pnand %p3405_p2, %p3696_p13 }
  0x36   : > { %p3408_p6 = pneg %p3407_p1 }
  0x38   : > { %p3413_p3 = pnand %p3411_p10, %p3408_p6 }
  0x3a   : > { %3416 = shalt.err (!%p3413_p3)
}
  0x3b   : > { %s3417_s19 = scalar_lea.vmem %s3686_s22, 4096  ;;  %p3425_p12 = scmp.lt.s32.totalorder %s3686_s22, %s3686_s22 }
  0x3c   : > { %p3418_p5 = scmp.ne.s32.totalorder %s3686_s22, %s3417_s19  ;;  %p3426_p0 = scmp.lt.s32.totalorder %s3417_s19, %s3417_s19 }
  0x3e   : > { %p3420_p7 = pnand %p3418_p5, %p3696_p13  ;;  %p3427_p2 = por %p3426_p0, %p3425_p12 }
  0x40   : > { %p3421_p9 = pneg %p3420_p7 }
  0x42   : > { %p3428_p1 = pnand %p3427_p2, %p3421_p9 }
  0x44   : > { %3431 = shalt.err (!%p3428_p1)
}
  0x45   : > { %s3570_s16 = smov 128   ;;  %s3571_s30 = smov 8  }
  0x46   : > { %3275 = dma.hbm_to_vmem [thread:$0]  (!%p3682_p11), %s4133_s3, 4096, %s3686_s22, [#allocation6], %s3570_s16, %s3570_s16, %s3571_s30  }
  0x47   : > { %s3572_s24 = smov [#allocation8]   ;;  %s3741_s26 = sadd.s32 1, %s3564_s12  }
  0x48   : > { %s296_s25 = sshll.u32 %s3572_s24, 4  ;;  %s3432_s14 = scalar_lea.hbm %s4135_s5, 512  ;;  %s297_s25 = int_to_ptr.vmem [resolvable:$true] %s296_s25 }
  0x49   : > { %p3433_p6 = scmp.ne.s32.totalorder %s4135_s5, %s3432_s14  ;;  %p3439_p5 = scmp.lt.u32.totalorder %s3432_s14, %s4135_s5 }
  0x4b   : > { %p3435_p10 = pnand %p3433_p6, %p3696_p13 }
  0x4d   : > { %p3436_p3 = pneg %p3435_p10 }
  0x4f   : > { %p3441_p7 = pnand %p3439_p5, %p3436_p3 }
  0x51   : > { %3444 = shalt.err (!%p3441_p7)
}
  0x52   : > { %s3445_s22 = scalar_lea.vmem %s297_s25, 512  ;;  %p3453_p2 = scmp.lt.s32.totalorder %s297_s25, %s297_s25 }
  0x53   : > { %p3446_p9 = scmp.ne.s32.totalorder %s297_s25, %s3445_s22  ;;  %p3454_p1 = scmp.lt.s32.totalorder %s3445_s22, %s3445_s22 }
  0x55   : > { %p3448_p12 = pnand %p3446_p9, %p3696_p13  ;;  %p3455_p4 = por %p3454_p1, %p3453_p2 }
  0x57   : > { %p3449_p0 = pneg %p3448_p12 }
  0x59   : > { %p3456_p8 = pnand %p3455_p4, %p3449_p0 }
  0x5b   : > { %3459 = shalt.err (!%p3456_p8)
}
  0x5c   : > { %3278 = dma.hbm_to_vmem [thread:$0]  (!%p3682_p11), %s4135_s5, 512, %s297_s25, [#allocation9], %s3570_s16, %s3570_s16, %s3571_s30  }
  0x5d   : > { %s31_s1 = ssub.s32 %s3564_s12, %s3741_s26  ;;  %s34_s9 = sadd.s32 1, %s3560_s11 }
  0x5e   : > { %p32_p4 = scmp.eq.s32.totalorder %s31_s1, 0  ;;  %p41_p8 = scmp.ne.s32.totalorder %s3560_s11, %s3556_s10 }
  0x5f   : > { %p42_p13 = scmp.eq.s32.totalorder %s3564_s12, 0  ;;  %p3290_p6 = scmp.lt.s32.totalorder %s3564_s12, 2 }
  0x60   : > { %s3769_s20 = scalar_select %p32_p4, %s3560_s11, %s34_s9  }
  0x61   : > { %p43_p10 = por %p42_p13, %p41_p8  ;;  %p4156_p3 = scmp.eq.s32.totalorder %s3652_s13, 1 }
  0x62   : > { %s319_s24 = sand.u32 1, %s3560_s11   ;;  %s2868_s27 = sshll.u32 %s3564_s12, 7 }
  0x63   : > { %p3773_p5 = por %p4156_p3, %p41_p8  ;;  %s2867_s29 = sshll.u32 %s319_s24, 3 }
  0x64   : > { %s3782_s16 = scalar_lea.hbm %s4130_s0, %s2868_s27  ;;  %s323_s30 = scalar_lea.vmem [#allocation2], %s2867_s29 }
  0x65   : > { %s330_s25 = sshll.u32 %s323_s30, 4  ;;  %p3784_p11 = pnand %p3290_p6, %p43_p10  ;;  %s3788_s25 = int_to_ptr.vmem [resolvable:$true] %s330_s25 }
  0x66   : > { %s320_s22 = scalar_lea.sflag [#allocation3], %s319_s24  ;;  %s3460_s21 = scalar_lea.hbm %s3782_s16, 128 }
  0x67   : > { %p3461_p7 = scmp.ne.s32.totalorder %s3782_s16, %s3460_s21  ;;  %p3462_p9 = pneg %p3784_p11 }
  0x68   : > { %s3465_s9 = scalar_lea.hbm %s4130_s0, 256  ;;  %p3466_p2 = scmp.lt.u32.totalorder %s3782_s16, %s4130_s0 }
  0x69   : > { %p3463_p12 = pnand %p3462_p9, %p3461_p7  ;;  %p3467_p1 = scmp.lt.u32.totalorder %s3465_s9, %s3460_s21 }
  0x6a   : > { %p3469_p8 = scmp.lt.u32.totalorder %s3460_s21, %s3782_s16 }
  0x6b   : > { %p3464_p0 = pneg %p3463_p12  ;;  %p3468_p4 = por %p3467_p1, %p3466_p2 }
  0x6d   : > { %p3470_p13 = por %p3469_p8, %p3468_p4 }
  0x6f   : > { %p3471_p6 = pnand %p3470_p13, %p3464_p0 }
  0x71   : > { %3474 = shalt.err (!%p3471_p6)
}
  0x72   : > { %s3475_s24 = scalar_lea.vmem %s3788_s25, 128  ;;  %s3573_s14 = smov [#allocation2]  }
  0x73   : > { %p3476_p10 = scmp.ne.s32.totalorder %s3788_s25, %s3475_s24  ;;  %s3480_s18 = sshll.u32 %s3573_s14, 4  ;;  %s3481_s18 = int_to_ptr.vmem [resolvable:$false] %s3480_s18 }
  0x74   : > { %s3482_s30 = scalar_lea.vmem %s3481_s18, 256  ;;  %p3483_p12 = scmp.lt.s32.totalorder %s3788_s25, %s3481_s18 }
  0x75   : > { %p3478_p3 = pnand %p3476_p10, %p3462_p9  ;;  %p3484_p2 = scmp.lt.s32.totalorder %s3482_s30, %s3475_s24 }
  0x77   : > { %p3479_p7 = pneg %p3478_p3  ;;  %p3485_p1 = por %p3484_p2, %p3483_p12 }
  0x79   : > { %p3486_p4 = pnand %p3485_p1, %p3479_p7 }
  0x7b   : > { %3489 = shalt.err (!%p3486_p4)
}
  0x7c   : > { %3282 = dma.hbm_to_vmem [thread:$0]  (!%p3784_p11), %s3782_s16, 128, %s3788_s25, %s320_s22  }
  0x7d   : > { %p4159_p0 = scmp.ne.s32.totalorder %s4152_s17, 0 }
  0x7e   : > { %s3818_s21 = sand.u32 (!%p4159_p0), 1, %s3556_s10   ;;  %p4160_p9 = scmp.ne.s32.totalorder (!%p4159_p0), %s4149_s15, 0 }
  0x7f   : > { %339 = sbr.rel (%p4159_p0) target bundleno = 5690 (0x163a), region = 56  ;;  %s2870_s23 = sshll.u32 (!%p4159_p0), %s3818_s21, 3 }
  0x80   : > { %s342_s1 = scalar_lea.sflag (!%p4159_p0), [#allocation3], %s3818_s21  ;;  %s3824_s9 = scalar_lea.vmem (!%p4159_p0), [#allocation2], %s2870_s23 }
  0x86   : > { %3535 = dma.done.wait (%p4160_p9), %s342_s1, 128  }
  0x87   : > { %3537 = vsyncadd (%p4160_p9), %s342_s1, 4294967168  ;;  %p4161_p11 = scmp.eq.s32.totalorder %s3652_s13, 0 }
  0x89   : > { %3539 = dma.done.wait (%p4161_p11), [#allocation6], 7168   ;;  %p4162_p8 = pmov %p4161_p11 }
  0x8b   : > { %3541 = vsyncadd (%p4162_p8), [#allocation6], 4294960128  ;;  %p4163_p13 = pmov %p4162_p8 }
  0x8c   : > { %p4164_p6 = pmov %p4162_p8 }
  0x8d   : > { %3543 = dma.done.wait (%p4163_p13), [#allocation9], 512  }
  0x8e   : > { %3545 = vsyncadd (%p4164_p6), [#allocation9], 4294966784  ;;  %v3574_v0 = vmov 0.0   ;;  %v396_v1 = vld [vmem:[#allocation5 + $0x18] sm:$0xff]  ;;  %v402_v2 = vld [vmem:[#allocation5 + $0x48] sm:$0xff]  ;;  %vm449_vm0 = vcmask 261120   ;;  %v419_v38 = vlaneseq }
  0x8f   : > { %588 = vmatprep.mubr.f32.mxu1 %v3574_v0  ;;  %517 = vmatprep.mubr.f32.mxu0 %v3574_v0  ;;  %v395_v3 = vld [vmem:[#allocation5 + $0x10] sm:$0xff]  ;;  %v3183_v4 = vpack.c.bf16 %v402_v2, %v396_v1  ;;  %v401_v5 = vld [vmem:[#allocation5 + $0x40] sm:$0xff]  ;;  %v394_v6 = vld [vmem:[#allocation5 + $0x8] sm:$0xff]  ;;  %vm3575_vm1 = vmmov 0   ;;  %s3576_s16 = smov 96   ;;  %vm744_vm2 = vcmask 64512  }
  0x90   : > { %v400_v7 = vld [vmem:[#allocation5 + $0x38] sm:$0xff]  ;;  %v3185_v8 = vpack.c.bf16 %v401_v5, %v395_v3  ;;  %v393_v10 = vld [vmem:[#allocation5] sm:$0xff]  ;;  %v399_v11 = vld [vmem:[#allocation5 + $0x30] sm:$0xff]  ;;  %v3856_v39 = vshrl.u32 %v419_v38, 7  ;;  %s3577_s25 = smov 64   ;;  %s3578_s19 = smov 32  }
  0x91   : > { %v3175_v9 = vpack.c.bf16 %v400_v7, %v394_v6  ;;  %v408_v12 = vld [vmem:[#allocation5 + $0x78] sm:$0xff]  ;;  %3184 = vmatprep.subr.bf16.mxu1 %v3183_v4  ;;  %v3177_v13 = vpack.c.bf16 %v399_v11, %v393_v10  ;;  %v414_v14 = vld [vmem:[#allocation5 + $0xa8] sm:$0xff]  ;;  %v407_v15 = vld [vmem:[#allocation5 + $0x70] sm:$0xff]  ;;  %s391_s15 = scalar_lea.vmem [#allocation10], %s2870_s23  ;;  %s2749_s27 = scalar_lea.sflag [#allocation4], %s3818_s21 }
  0x92   : > { %v413_v16 = vld [vmem:[#allocation5 + $0xa0] sm:$0xff]  ;;  %3186 = vmatpush1.bf16.msra.mxu1 %v3185_v8  ;;  %v3187_v17 = vpack.c.bf16 %v414_v14, %v408_v12  ;;  %v406_v19 = vld [vmem:[#allocation5 + $0x68] sm:$0xff]  ;;  %v412_v20 = vld [vmem:[#allocation5 + $0x98] sm:$0xff]  ;;  %v429_v40 = vsub.s32 2, %v3856_v39  ;;  %v421_v42 = vsub.s32 0, %v3856_v39  ;;  %v437_v51 = vsub.s32 4, %v3856_v39 }
  0x93   : > { %3176 = vmatprep.subr.bf16.mxu0 %v3175_v9  ;;  %v3189_v18 = vpack.c.bf16 %v413_v16, %v407_v15  ;;  %v405_v21 = vld [vmem:[#allocation5 + $0x60] sm:$0xff]  ;;  %v3179_v22 = vpack.c.bf16 %v412_v20, %v406_v19  ;;  %v411_v23 = vld [vmem:[#allocation5 + $0x90] sm:$0xff]  ;;  %v398_v26 = vld [vmem:[#allocation5 + $0x28] sm:$0xff]  ;;  %v3579_v12 = vmov 0.0|0.0   ;;  %s2762_s17 = sshll.u32 %s391_s15, 4  ;;  %s4087_s17 = int_to_ptr.vmem [resolvable:$true] %s2762_s17 }
  0x94   : > { %3178 = vmatpush1.bf16.msra.mxu0 %v3177_v13  ;;  %3188 = vmatprep.subr.bf16.mxu1 %v3187_v17  ;;  %v3181_v24 = vpack.c.bf16 %v411_v23, %v405_v21  ;;  %v3841_v25 = vld [vmem:[%s3824_s9] sm:$0xff]  ;;  %v397_v28 = vld [vmem:[#allocation5 + $0x20] sm:$0xff]  ;;  %v410_v31 = vld [vmem:[#allocation5 + $0x88] sm:$0xff]  ;;  %s2916_s9 = sshll.u32 %s3652_s13, 7  ;;  %s3490_s29 = scalar_lea.vmem %s4087_s17, 128 }
  0x95   : > { %3180 = vmatprep.subr.bf16.mxu0 %v3179_v22  ;;  %v404_v27 = vld [vmem:[#allocation5 + $0x58] sm:$0xff]  ;;  %v403_v30 = vld [vmem:[#allocation5 + $0x50] sm:$0xff]  ;;  %v409_v35 = vld [vmem:[#allocation5 + $0x80] sm:$0xff]  ;;  %p3491_p10 = scmp.ne.s32.totalorder %s4087_s17, %s3490_s29  ;;  %s3580_s13 = smov [#allocation10]  }
  0x96   : > { %3190 = vmatpush1.bf16.msra.mxu1 %v3189_v18  ;;  %v3191_v29 = vpack.c.bf16 %v404_v27, %v398_v26  ;;  %v416_v32 = vld [vmem:[#allocation5 + $0xb8] sm:$0xff]  ;;  %v3193_v33 = vpack.c.bf16 %v403_v30, %v397_v28  ;;  %v415_v36 = vld [vmem:[#allocation5 + $0xb0] sm:$0xff]  ;;  %v1000_v15 = vld [vmem:[#allocation7 + $0x20] sm:$0xff]  ;;  %s3494_s23 = sshll.u32 %s3580_s13, 4  ;;  %s3495_s23 = int_to_ptr.vmem [resolvable:$false] %s3494_s23 }
  0x97   : > { %2996 = vmatprep.subr.mxu1 %v3574_v0  ;;  %v3195_v34 = vpack.c.bf16 %v416_v32, %v410_v31  ;;  %v3197_v37 = vpack.c.bf16 %v415_v36, %v409_v35  ;;  %v3862_v41 = vld [vmem:[%s4132_s2] sm:$0x3f]  ;;  %v1001_v16 = vld [vmem:[#allocation7 + $0x28] sm:$0xff]  ;;  %v1003_v19 = vld [vmem:[#allocation7 + $0x38] sm:$0xff]  ;;  %p3492_p3 = pnand %p3491_p10, %p3773_p5  ;;  %s3496_s24 = scalar_lea.vmem %s3495_s23, 256 }
  0x98   : > { %3182 = vmatpush1.bf16.msra.mxu0 %v3181_v24  ;;  %v430_v43 = vrot.slane %v3862_v41, %v429_v40  ;;  %v422_v44 = vrot.slane %v3862_v41, %v421_v42  ;;  %v438_v52 = vrot.slane %v3862_v41, %v437_v51  ;;  %v1002_v17 = vld [vmem:[#allocation7 + $0x30] sm:$0xff]  ;;  %v3200_v18 = vpack.c.bf16 %v1001_v16, %v1000_v15  ;;  %v829_v23 = vld [vmem:[#allocation7] sm:$0xff]  ;;  %v830_v24 = vld [vmem:[#allocation7 + $0x8] sm:$0xff]  ;;  %p3497_p12 = scmp.lt.s32.totalorder %s4087_s17, %s3495_s23  ;;  %p3498_p2 = scmp.lt.s32.totalorder %s3496_s24, %s3490_s29 }
  0x99   : > { %2876 = vmatmul.mubr.msk.f32.vlgmr.msra.gmra.mrb[0].mxu1 %vm449_vm0, %v3841_v25  ;;  %3192 = vmatprep.subr.bf16.mxu0 %v3191_v29  ;;  %v3203_v20 = vpack.c.bf16 %v1003_v19, %v1002_v17  ;;  %v3206_v27 = vpack.c.bf16 %v830_v24, %v829_v23  ;;  %v831_v29 = vld [vmem:[#allocation7 + $0x10] sm:$0xff]  ;;  %v832_v30 = vld [vmem:[#allocation7 + $0x18] sm:$0xff]  ;;  %p3493_p7 = pneg %p3492_p3 }
  0x9a   : > { %2998 = vmatprep.mubr.msk.f32.mxu1 %vm3575_vm1, %v3574_v0  ;;  %v3209_v31 = vpack.c.bf16 %v832_v30, %v831_v29  ;;  %p3499_p1 = por %p3498_p2, %p3497_p12 }
  0x9b   : > { %2875 = vmatmul.mubr.msk.f32.vlgmr.msra.gmra.mrb[0].mxu0 %vm449_vm0, %v3841_v25 }
  0x9c   : > { %659 = vmatprep.mubr.f32.mxu0 %v3574_v0  ;;  %3194 = vmatpush1.bf16.msra.mxu0 %v3193_v33  ;;  %p3500_p4 = pnand %p3499_p1, %p3493_p7 }
  0x9d   : > { %3196 = vmatprep.subr.bf16.mxu0 %v3195_v34 }
  0xa0   : > { %3198 = vmatpush1.bf16.msra.mxu0 %v3197_v37 }
  0xa1   : > { %3006 = vmatprep.subr.mxu0 %v3574_v0 }
  0xa3   : > { %2877 = vmatmul.mubr.msk.f32.vlgmr.msra.gmra.mrb[2].mxu0 %vm449_vm0, %v3841_v25 }
  0xa4   : > { %3008 = vmatprep.mubr.msk.f32.mxu0 %vm3575_vm1, %v3574_v0 }
 0x16c   : > { %v590_v45 = vpop.f32.mrb[0].mxu1 }
 0x16d   : > { %v591_v46 = vadd.f32 %v590_v45, %v430_v43  ;;  %v3867_v47 = vpop.f32.mrb[1].mxu1 }
 0x16e   : > { %v519_v48 = vpop.f32.mrb[0].mxu0 }
 0x16f   : > { %v3869_v49 = vadd.f32 %v519_v48, %v422_v44  ;;  %v3871_v50 = vpop.f32.mrb[1].mxu0  ;;  %835 = vrot.lane.b32.xlu0 %v591_v46, %s3576_s16  ;;  %2997 = vmatpush3.xpose.msk.msra.mxu1 %vm449_vm0, %v591_v46 }
 0x170   : > { %3001 = vmatprep.subr.mxu1 %v3574_v0 }
 0x172   : > { %2999 = vmatmul.mubr.msk.f32.vlgmr.msra.gmra.mrb[2].mxu1 %vm449_vm0, %v3869_v49 }
 0x173   : > { %833 = vrot.lane.b32.xlu0 %v3869_v49, %s3576_s16  ;;  %3003 = vmatprep.mubr.msk.f32.mxu1 %vm3575_vm1, %v3574_v0 }
 0x176   : > { %v661_v53 = vpop.f32.mrb[2].mxu0 }
 0x177   : > { %v3884_v54 = vadd.f32 %v661_v53, %v438_v52  ;;  %v3886_v55 = vpop.f32.mrb[3].mxu0 }
 0x179   : > { %3002 = vmatpush3.msra.mxu1 %v3884_v54 }
 0x17a   : > { %3011 = vmatprep.subr.mxu1 %v3574_v0 }
 0x1e1   : > { %v836_v56 = vpop.permute.xlu0 %835 }
 0x1e2   : > { %3007 = vmatpush3.xpose.msk.msra.mxu0 %vm449_vm0, %v836_v56 }
 0x1e3   : > { %3199 = vmatprep.subr.bf16.mxu0 %v3579_v12 }
 0x1e5   : > { %v834_v57 = vpop.permute.xlu0 %833 }
 0x1e6   : > { %3009 = vmatmul.mubr.msk.f32.vlgmr.msra.gmra.mrb[4].mxu0 %vm449_vm0, %v834_v57 }
 0x1e7   : > { %3024 = vmatprep.mubr.msk.f32.mxu0 %vm3575_vm1, %v3574_v0  ;;  %3201 = vmatpush3.bf16.msra.mxu0 %v3200_v18 }
 0x1e8   : > { %3202 = vmatprep.subr.bf16.mxu0 %v3579_v12 }
 0x1eb   : > { %3204 = vmatpush3.bf16.msra.mxu0 %v3203_v20  ;;  %v1560_v20 = vld [vmem:[#allocation7 + $0x60] sm:$0xff] }
 0x1ec   : > { %3038 = vmatprep.subr.mxu0 %v3574_v0 }
 0x245   : > { %v740_v58 = vpop.f32.mrb[2].mxu1 }
 0x246   : > { %v3000_v59 = vpop.f32.mrb[3].mxu1  ;;  %v745_v60 = vsel %vm744_vm2, %v740_v58, -inf }
 0x247   : > { %746 = vmax.xlane.f32.xlu1 %v745_v60  ;;  %v1316_v59 = vld [vmem:[#allocation7 + $0x40] sm:$0xff]  ;;  %v1317_v60 = vld [vmem:[#allocation7 + $0x48] sm:$0xff] }
 0x2b9   : > { %v907_v61 = vpop.f32.mrb[4].mxu0 }
 0x2ba   : > { %v3010_v62 = vpop.f32.mrb[5].mxu0  ;;  %v911_v63 = vsel %vm744_vm2, %v907_v61, -inf }
 0x2bb   : > { %912 = vmax.xlane.f32.xlu1 %v911_v63  ;;  %v3212_v62 = vpack.c.bf16 %v1317_v60, %v1316_v59  ;;  %v1319_v63 = vld [vmem:[#allocation7 + $0x58] sm:$0xff] }
 0x2d4   : > { %v747_v1 = vpop.xlane.xlu1 %746 }
 0x2d5   : > { %v748_v2 = vsub.f32 %v740_v58, %v747_v1 }
 0x2d7   : > { %v749_v3 = vmul.f32 1.442695, %v748_v2 }
 0x2d9   : > { %3340 = vpow2.f32 %v749_v3 }
 0x2e3   : > { %v3341_v4 = vpop.eup %3340 }
 0x2e4   : > { %v751_v5 = vsel %vm744_vm2, %v3341_v4, 0.0 }
 0x2e5   : > { %752 = vadd.xlane.f32.xlu0 %v751_v5 }
 0x2fb   : > { %1239 = vrot.lane.b32.xlu0 %v3884_v54, %s3577_s25 }
 0x2ff   : > { %1396 = vrot.lane.b32.xlu0 %v591_v46, %s3578_s19 }
 0x348   : > { %v913_v6 = vpop.xlane.xlu1 %912 }
 0x349   : > { %v914_v7 = vsub.f32 %v907_v61, %v913_v6  ;;  %v1318_v61 = vld [vmem:[#allocation7 + $0x50] sm:$0xff] }
 0x34a   : > { %v3215_v1 = vpack.c.bf16 %v1319_v63, %v1318_v61 }
 0x34b   : > { %v915_v8 = vmul.f32 1.442695, %v914_v7 }
 0x34d   : > { %3342 = vpow2.f32 %v915_v8 }
 0x357   : > { %v3343_v9 = vpop.eup %3342 }
 0x358   : > { %v917_v10 = vsel %vm744_vm2, %v3343_v9, 0.0 }
 0x359   : > { %918 = vadd.xlane.f32.xlu1 %v917_v10 }
 0x36a   : > { %923 = vrot.lane.b32.xlu1 %v3884_v54, %s3576_s16 }
 0x36e   : > { %1152 = vrot.lane.b32.xlu1 %v591_v46, %s3577_s25 }
 0x372   : > { %v753_v11 = vpop.xlane.xlu0 %752  ;;  %1150 = vrot.lane.b32.xlu1 %v3869_v49, %s3577_s25 }
 0x373   : > { %3344 = vrcp.f32 %v753_v11  ;;  %v433_v11 = vsub.s32 3, %v3856_v39 }
 0x376   : > { %v1240_v33 = vpop.permute.xlu0 %1239 }
 0x37a   : > { %v1397_v2 = vpop.permute.xlu0 %1396 }
 0x37d   : > { %v3345_v13 = vpop.eup %3344 }
 0x37e   : > { %v755_v14 = vmul.f32 %v3345_v13, %v3341_v4  ;;  %v434_v13 = vrot.slane %v3862_v41, %v433_v11 }
 0x380   : > { %3004 = vmatmul.mubr.msk.f32.vlgmr.msra.gmra.mrb[4].mxu1 %vm744_vm2, %v755_v14  ;;  %v3953_v14 = vadd.f32 %v3867_v47, %v434_v13  ;;  %v1563_v47 = vld [vmem:[#allocation7 + $0x78] sm:$0xff]  ;;  %v2044_v13 = vld [vmem:[#allocation7 + $0xa0] sm:$0xff] }
 0x381   : > { %3013 = vmatprep.mubr.msk.f32.mxu1 %vm3575_vm1, %v3574_v0 }
 0x3e6   : > { %v919_v21 = vpop.xlane.xlu1 %918 }
 0x3e7   : > { %3346 = vrcp.f32 %v919_v21  ;;  %v1561_v21 = vld [vmem:[#allocation7 + $0x68] sm:$0xff] }
 0x3e8   : > { %v3218_v23 = vpack.c.bf16 %v1561_v21, %v1560_v20 }
 0x3ea   : > { %v924_v22 = vpop.permute.xlu1 %923 }
 0x3eb   : > { %3012 = vmatpush3.msra.mxu1 %v924_v22  ;;  %v1562_v22 = vld [vmem:[#allocation7 + $0x70] sm:$0xff] }
 0x3ec   : > { %3205 = vmatprep.subr.bf16.mxu1 %v3579_v12  ;;  %v3221_v24 = vpack.c.bf16 %v1563_v47, %v1562_v22 }
 0x3ee   : > { %v1153_v35 = vpop.permute.xlu1 %1152 }
 0x3f1   : > { %v3347_v26 = vpop.eup %3346 }
 0x3f2   : > { %v921_v28 = vmul.f32 %v3347_v26, %v3343_v9  ;;  %v1151_v38 = vpop.permute.xlu1 %1150 }
 0x3f4   : > { %3014 = vmatmul.mubr.msk.f32.vlgmr.msra.gmra.mrb[6].mxu1 %vm744_vm2, %v921_v28 }
 0x3f5   : > { %3207 = vmatpush3.bf16.msra.mxu1 %v3206_v27  ;;  %3035 = vmatprep.mubr.msk.f32.mxu1 %vm3575_vm1, %v3574_v0 }
 0x3f6   : > { %3208 = vmatprep.subr.bf16.mxu1 %v3579_v12 }
 0x3f9   : > { %3210 = vmatpush3.bf16.msra.mxu1 %v3209_v31  ;;  %v441_v31 = vsub.s32 5, %v3856_v39 }
 0x3fa   : > { %3043 = vmatprep.subr.mxu1 %v3574_v0 }
 0x453   : > { %v825_v32 = vpop.f32.mrb[4].mxu1 }
 0x454   : > { %v3005_v34 = vpop.f32.mrb[5].mxu1  ;;  %3036 = vmatmul.mubr.msk.f32.vlgmr.msra.gmra.mrb[8].mxu1 %vm449_vm0, %v825_v32 }
 0x455   : > { %3044 = vmatpush3.msra.mxu1 %v1240_v33  ;;  %3045 = vmatprep.mubr.msk.f32.mxu1 %vm3575_vm1, %v3574_v0 }
 0x456   : > { %3059 = vmatprep.subr.mxu1 %v3574_v0 }
 0x4c7   : > { %v995_v36 = vpop.f32.mrb[6].mxu1 }
 0x4c8   : > { %v3015_v37 = vpop.f32.mrb[7].mxu1  ;;  %3025 = vmatmul.mubr.msk.f32.vlgmr.msra.gmra.mrb[6].mxu0 %vm449_vm0, %v995_v36 }
 0x4c9   : > { %3039 = vmatpush3.xpose.msk.msra.mxu0 %vm449_vm0, %v1153_v35  ;;  %3040 = vmatprep.mubr.msk.f32.mxu0 %vm3575_vm1, %v3574_v0  ;;  %v442_v35 = vrot.slane %v3862_v41, %v441_v31 }
 0x4ca   : > { %3211 = vmatprep.subr.bf16.mxu0 %v3579_v12 }
 0x4cc   : > { %3041 = vmatmul.mubr.msk.f32.vlgmr.msra.gmra.mrb[8].mxu0 %vm449_vm0, %v1151_v38 }
 0x4cd   : > { %3056 = vmatprep.mubr.msk.f32.mxu0 %vm3575_vm1, %v3574_v0  ;;  %3213 = vmatpush3.bf16.msra.mxu0 %v3212_v62 }
 0x4ce   : > { %3214 = vmatprep.subr.bf16.mxu0 %v3579_v12 }
 0x4d1   : > { %3216 = vmatpush3.bf16.msra.mxu0 %v3215_v1 }
 0x4d2   : > { %3217 = vmatprep.subr.bf16.mxu0 %v3579_v12 }
 0x527   : > { %v1146_v40 = vpop.f32.mrb[8].mxu1 }
 0x528   : > { %v3037_v42 = vpop.f32.mrb[9].mxu1 }
 0x59b   : > { %v1073_v43 = vpop.f32.mrb[6].mxu0 }
 0x59c   : > { %v3930_v44 = vadd.f32 %v1146_v40, %v1073_v43  ;;  %v3026_v45 = vpop.f32.mrb[7].mxu0 }
 0x59f   : > { %v1224_v46 = vpop.f32.mrb[8].mxu0 }
 0x5a0   : > { %v3042_v48 = vpop.f32.mrb[9].mxu0  ;;  %v1228_v51 = vsel %vm744_vm2, %v1224_v46, -inf }
 0x5a1   : > { %1229 = vmax.xlane.f32.xlu1 %v1228_v51  ;;  %v1800_v48 = vld [vmem:[#allocation7 + $0x88] sm:$0xff]  ;;  %v1801_v51 = vld [vmem:[#allocation7 + $0x90] sm:$0xff] }
 0x62e   : > { %v1230_v52 = vpop.xlane.xlu1 %1229 }
 0x62f   : > { %v1231_v53 = vsub.f32 %v1224_v46, %v1230_v52  ;;  %v1799_v46 = vld [vmem:[#allocation7 + $0x80] sm:$0xff] }
 0x630   : > { %v3224_v52 = vpack.c.bf16 %v1800_v48, %v1799_v46 }
 0x631   : > { %v1232_v56 = vmul.f32 1.442695, %v1231_v53  ;;  %v1802_v53 = vld [vmem:[#allocation7 + $0x98] sm:$0xff] }
 0x633   : > { %3348 = vpow2.f32 %v1232_v56  ;;  %v3227_v56 = vpack.c.bf16 %v1802_v53, %v1801_v51 }
 0x63d   : > { %v3349_v57 = vpop.eup %3348 }
 0x63e   : > { %v1234_v58 = vsel %vm744_vm2, %v3349_v57, 0.0 }
 0x63f   : > { %1235 = vadd.xlane.f32.xlu0 %v1234_v58 }
 0x655   : > { %1394 = vrot.lane.b32.xlu0 %v3869_v49, %s3578_s19 }
 0x6cc   : > { %v1236_v3 = vpop.xlane.xlu0 %1235 }
 0x6cd   : > { %3350 = vrcp.f32 %v1236_v3 }
 0x6d0   : > { %v1395_v49 = vpop.permute.xlu0 %1394 }
 0x6d7   : > { %v3351_v4 = vpop.eup %3350 }
 0x6d8   : > { %v1238_v5 = vmul.f32 %v3351_v4, %v3349_v57 }
 0x6da   : > { %3046 = vmatmul.mubr.msk.f32.vlgmr.msra.gmra.mrb[10].mxu1 %vm744_vm2, %v1238_v5 }
 0x6db   : > { %3060 = vmatpush3.xpose.msk.msra.mxu1 %vm449_vm0, %v1397_v2  ;;  %3061 = vmatprep.mubr.msk.f32.mxu1 %vm3575_vm1, %v3574_v0 }
 0x6dc   : > { %3064 = vmatprep.subr.mxu1 %v3574_v0 }
 0x6de   : > { %3062 = vmatmul.mubr.msk.f32.vlgmr.msra.gmra.mrb[12].mxu1 %vm449_vm0, %v1395_v49 }
 0x6df   : > { %3066 = vmatprep.mubr.msk.f32.mxu1 %vm3575_vm1, %v3574_v0 }
 0x7ad   : > { %v1311_v6 = vpop.f32.mrb[10].mxu1 }
 0x7ae   : > { %v3047_v7 = vpop.f32.mrb[11].mxu1  ;;  %3057 = vmatmul.mubr.msk.f32.vlgmr.msra.gmra.mrb[10].mxu0 %vm449_vm0, %v1311_v6 }
 0x7af   : > { %3077 = vmatprep.mubr.msk.f32.mxu0 %vm3575_vm1, %v3574_v0  ;;  %3219 = vmatpush3.bf16.msra.mxu0 %v3218_v23 }
 0x7b0   : > { %3220 = vmatprep.subr.bf16.mxu0 %v3579_v12 }
 0x7b1   : > { %v1468_v8 = vpop.f32.mrb[12].mxu1 }
 0x7b2   : > { %v3063_v9 = vpop.f32.mrb[13].mxu1  ;;  %v1472_v10 = vsel %vm744_vm2, %v1468_v8, -inf }
 0x7b3   : > { %1473 = vmax.xlane.f32.xlu0 %v1472_v10  ;;  %3222 = vmatpush3.bf16.msra.mxu0 %v3221_v24 }
 0x7b4   : > { %3223 = vmatprep.subr.bf16.mxu0 %v3579_v12 }
 0x7c9   : > { %1879 = vrot.lane.b32.xlu0 %v3953_v14, %s3576_s16 }
 0x840   : > { %v1474_v15 = vpop.xlane.xlu0 %1473 }
 0x841   : > { %v1475_v16 = vsub.f32 %v1468_v8, %v1474_v15  ;;  %v2045_v15 = vld [vmem:[#allocation7 + $0xa8] sm:$0xff] }
 0x843   : > { %v1476_v17 = vmul.f32 1.442695, %v1475_v16  ;;  %v2046_v16 = vld [vmem:[#allocation7 + $0xb0] sm:$0xff] }
 0x844   : > { %v1880_v60 = vpop.permute.xlu0 %1879 }
 0x845   : > { %3352 = vpow2.f32 %v1476_v17  ;;  %v3230_v17 = vpack.c.bf16 %v2045_v15, %v2044_v13 }
 0x84f   : > { %v3353_v18 = vpop.eup %3352 }
 0x850   : > { %v1478_v19 = vsel %vm744_vm2, %v3353_v18, 0.0 }
 0x851   : > { %1479 = vadd.xlane.f32.xlu1 %v1478_v19 }
 0x862   : > { %1483 = vrot.lane.b32.xlu1 %v3884_v54, %s3578_s19  ;;  %v425_v54 = vsub.s32 1, %v3856_v39  ;;  %v3978_v39 = vadd.f32 %v3886_v55, %v442_v35 }
 0x864   : > { %v426_v33 = vrot.slane %v3862_v41, %v425_v54 }
 0x866   : > { %v3974_v36 = vadd.f32 %v3871_v50, %v426_v33 }
 0x881   : > { %v1389_v26 = vpop.f32.mrb[10].mxu0 }
 0x882   : > { %v1393_v27 = vadd.f32 %v1389_v26, %v3930_v44  ;;  %v3058_v28 = vpop.f32.mrb[11].mxu0 }
 0x8de   : > { %v1480_v29 = vpop.xlane.xlu1 %1479 }
 0x8df   : > { %3354 = vrcp.f32 %v1480_v29 }
 0x8e2   : > { %v1484_v30 = vpop.permute.xlu1 %1483 }
 0x8e3   : > { %3065 = vmatpush3.msra.mxu1 %v1484_v30 }
 0x8e4   : > { %3080 = vmatprep.subr.mxu1 %v3574_v0 }
 0x8e9   : > { %v3355_v32 = vpop.eup %3354 }
 0x8ea   : > { %v1482_v34 = vmul.f32 %v3355_v32, %v3353_v18  ;;  %v2047_v18 = vld [vmem:[#allocation7 + $0xb8] sm:$0xff] }
 0x8eb   : > { %v3233_v19 = vpack.c.bf16 %v2047_v18, %v2046_v16  ;;  %v2910_v18 = vld [vmem:[%s4134_s4] ss:$0 sm:$0xff] }
 0x8ec   : > { %3067 = vmatmul.mubr.msk.f32.vlgmr.msra.gmra.mrb[14].mxu1 %vm744_vm2, %v1482_v34 }
 0x8ed   : > { %3081 = vmatpush3.xpose.msk.msra.mxu1 %vm449_vm0, %v3953_v14  ;;  %3082 = vmatprep.mubr.msk.f32.mxu1 %vm3575_vm1, %v3574_v0 }
 0x8ee   : > { %3085 = vmatprep.subr.mxu1 %v3574_v0 }
 0x8f0   : > { %3083 = vmatmul.mubr.msk.f32.vlgmr.msra.gmra.mrb[16].mxu1 %vm449_vm0, %v3974_v36 }
 0x8f1   : > { %3086 = vmatpush3.msra.mxu1 %v3978_v39  ;;  %3087 = vmatprep.mubr.msk.f32.mxu1 %vm3575_vm1, %v3574_v0 }
 0x8f2   : > { %3101 = vmatprep.subr.mxu1 %v3574_v0 }
 0x9bf   : > { %v1555_v41 = vpop.f32.mrb[14].mxu1 }
 0x9c0   : > { %v3068_v37 = vpop.f32.mrb[15].mxu1  ;;  %3078 = vmatmul.mubr.msk.f32.vlgmr.msra.gmra.mrb[12].mxu0 %vm449_vm0, %v1555_v41 }
 0x9c1   : > { %3098 = vmatprep.mubr.msk.f32.mxu0 %vm3575_vm1, %v3574_v0  ;;  %3225 = vmatpush3.bf16.msra.mxu0 %v3224_v52  ;;  %v2288_v37 = vld [vmem:[#allocation7 + $0xc0] sm:$0xff] }
 0x9c2   : > { %3226 = vmatprep.subr.bf16.mxu0 %v3579_v12 }
 0x9c3   : > { %v1710_v50 = vpop.f32.mrb[16].mxu1 }
 0x9c4   : > { %v3084_v55 = vpop.f32.mrb[17].mxu1  ;;  %v1714_v38 = vsel %vm744_vm2, %v1710_v50, -inf }
 0x9c5   : > { %1715 = vmax.xlane.f32.xlu1 %v1714_v38  ;;  %3228 = vmatpush3.bf16.msra.mxu0 %v3227_v56  ;;  %v2290_v55 = vld [vmem:[#allocation7 + $0xd0] sm:$0xff] }
 0x9c6   : > { %3229 = vmatprep.subr.bf16.mxu0 %v3579_v12 }
 0xa52   : > { %v1716_v40 = vpop.xlane.xlu1 %1715 }
 0xa53   : > { %v1717_v42 = vsub.f32 %v1710_v50, %v1716_v40  ;;  %v2289_v50 = vld [vmem:[#allocation7 + $0xc8] sm:$0xff]  ;;  %v2291_v40 = vld [vmem:[#allocation7 + $0xd8] sm:$0xff] }
 0xa54   : > { %v3236_v38 = vpack.c.bf16 %v2289_v50, %v2288_v37  ;;  %v2912_v37 = vld [vmem:[%s4138_s8] ss:$0 sm:$0xff] }
 0xa55   : > { %v1718_v43 = vmul.f32 1.442695, %v1717_v42  ;;  %v3239_v42 = vpack.c.bf16 %v2291_v40, %v2290_v55 }
 0xa57   : > { %3356 = vpow2.f32 %v1718_v43 }
 0xa61   : > { %v3357_v44 = vpop.eup %3356 }
 0xa62   : > { %v1720_v45 = vsel %vm744_vm2, %v3357_v44, 0.0 }
 0xa63   : > { %1721 = vadd.xlane.f32.xlu0 %v1720_v45 }
 0xa79   : > { %1877 = vrot.lane.b32.xlu0 %v3974_v36, %s3576_s16 }
 0xa93   : > { %v1633_v57 = vpop.f32.mrb[12].mxu0 }
 0xa94   : > { %v1637_v58 = vadd.f32 %v1633_v57, %v1393_v27  ;;  %v3079_v59 = vpop.f32.mrb[13].mxu0 }
 0xaf0   : > { %v1722_v61 = vpop.xlane.xlu0 %1721 }
 0xaf1   : > { %3358 = vrcp.f32 %v1722_v61 }
 0xaf4   : > { %v1878_v1 = vpop.permute.xlu0 %1877 }
 0xafb   : > { %v3359_v62 = vpop.eup %3358 }
 0xafc   : > { %v1724_v63 = vmul.f32 %v3359_v62, %v3357_v44 }
 0xafe   : > { %3088 = vmatmul.mubr.msk.f32.vlgmr.msra.gmra.mrb[18].mxu1 %vm744_vm2, %v1724_v63 }
 0xaff   : > { %3102 = vmatpush3.xpose.msk.msra.mxu1 %vm449_vm0, %v1880_v60  ;;  %3103 = vmatprep.mubr.msk.f32.mxu1 %vm3575_vm1, %v3574_v0 }
 0xb00   : > { %3106 = vmatprep.subr.mxu1 %v3574_v0 }
 0xb02   : > { %3104 = vmatmul.mubr.msk.f32.vlgmr.msra.gmra.mrb[20].mxu1 %vm449_vm0, %v1878_v1 }
 0xb03   : > { %3108 = vmatprep.mubr.msk.f32.mxu1 %vm3575_vm1, %v3574_v0 }
 0xbd1   : > { %v1794_v2 = vpop.f32.mrb[18].mxu1 }
 0xbd2   : > { %v3089_v3 = vpop.f32.mrb[19].mxu1  ;;  %3099 = vmatmul.mubr.msk.f32.vlgmr.msra.gmra.mrb[14].mxu0 %vm449_vm0, %v1794_v2 }
 0xbd3   : > { %3119 = vmatprep.mubr.msk.f32.mxu0 %vm3575_vm1, %v3574_v0  ;;  %3231 = vmatpush3.bf16.msra.mxu0 %v3230_v17  ;;  %v2532_v3 = vld [vmem:[#allocation7 + $0xe0] sm:$0xff] }
 0xbd4   : > { %3232 = vmatprep.subr.bf16.mxu0 %v3579_v12 }
 0xbd5   : > { %v1951_v4 = vpop.f32.mrb[20].mxu1 }
 0xbd6   : > { %v3105_v5 = vpop.f32.mrb[21].mxu1  ;;  %v1955_v49 = vsel %vm744_vm2, %v1951_v4, -inf }
 0xbd7   : > { %1956 = vmax.xlane.f32.xlu1 %v1955_v49  ;;  %3234 = vmatpush3.bf16.msra.mxu0 %v3233_v19  ;;  %v2534_v5 = vld [vmem:[#allocation7 + $0xf0] sm:$0xff] }
 0xbd8   : > { %3235 = vmatprep.subr.bf16.mxu0 %v3579_v12 }
 0xbe8   : > { %1967 = vrot.lane.b32.xlu1 %v3978_v39, %s3576_s16 }
 0xbec   : > { %2124 = vrot.lane.b32.xlu1 %v3953_v14, %s3577_s25 }
 0xbf0   : > { %2122 = vrot.lane.b32.xlu1 %v3974_v36, %s3577_s25 }
 0xc64   : > { %v1957_v6 = vpop.xlane.xlu1 %1956 }
 0xc65   : > { %v1958_v7 = vsub.f32 %v1951_v4, %v1957_v6  ;;  %v2533_v4 = vld [vmem:[#allocation7 + $0xe8] sm:$0xff]  ;;  %v2535_v6 = vld [vmem:[#allocation7 + $0xf8] sm:$0xff] }
 0xc66   : > { %v3242_v49 = vpack.c.bf16 %v2533_v4, %v2532_v3 }
 0xc67   : > { %v1959_v8 = vmul.f32 1.442695, %v1958_v7  ;;  %v3245_v7 = vpack.c.bf16 %v2535_v6, %v2534_v5 }
 0xc68   : > { %v1968_v9 = vpop.permute.xlu1 %1967 }
 0xc69   : > { %3360 = vpow2.f32 %v1959_v8  ;;  %3107 = vmatpush3.msra.mxu1 %v1968_v9 }
 0xc6a   : > { %3122 = vmatprep.subr.mxu1 %v3574_v0 }
 0xc6c   : > { %v2125_v24 = vpop.permute.xlu1 %2124 }
 0xc70   : > { %v2123_v26 = vpop.permute.xlu1 %2122 }
 0xc73   : > { %v3361_v10 = vpop.eup %3360 }
 0xc74   : > { %v1961_v11 = vsel %vm744_vm2, %v3361_v10, 0.0 }
 0xc75   : > { %1962 = vadd.xlane.f32.xlu0 %v1961_v11 }
 0xc8b   : > { %2211 = vrot.lane.b32.xlu0 %v3978_v39, %s3577_s25 }
 0xc8f   : > { %2368 = vrot.lane.b32.xlu0 %v3953_v14, %s3578_s19 }
 0xca5   : > { %v1872_v20 = vpop.f32.mrb[14].mxu0 }
 0xca6   : > { %v1876_v21 = vadd.f32 %v1872_v20, %v1637_v58  ;;  %v3100_v22 = vpop.f32.mrb[15].mxu0 }
 0xd02   : > { %v1963_v23 = vpop.xlane.xlu0 %1962 }
 0xd03   : > { %3362 = vrcp.f32 %v1963_v23 }
 0xd06   : > { %v2212_v27 = vpop.permute.xlu0 %2211 }
 0xd0a   : > { %v2369_v46 = vpop.permute.xlu0 %2368 }
 0xd0d   : > { %v3363_v47 = vpop.eup %3362 }
 0xd0e   : > { %v1965_v14 = vmul.f32 %v3363_v47, %v3361_v10 }
 0xd10   : > { %3109 = vmatmul.mubr.msk.f32.vlgmr.msra.gmra.mrb[22].mxu1 %vm744_vm2, %v1965_v14 }
 0xd11   : > { %3123 = vmatpush3.xpose.msk.msra.mxu1 %vm449_vm0, %v2125_v24  ;;  %3124 = vmatprep.mubr.msk.f32.mxu1 %vm3575_vm1, %v3574_v0 }
 0xd12   : > { %3127 = vmatprep.subr.mxu1 %v3574_v0 }
 0xd14   : > { %3125 = vmatmul.mubr.msk.f32.vlgmr.msra.gmra.mrb[24].mxu1 %vm449_vm0, %v2123_v26 }
 0xd15   : > { %3128 = vmatpush3.msra.mxu1 %v2212_v27  ;;  %3129 = vmatprep.mubr.msk.f32.mxu1 %vm3575_vm1, %v3574_v0  ;;  %v2647_v27 = vld [vmem:[#allocation8] sm:$0xff] }
 0xd16   : > { %3143 = vmatprep.subr.mxu1 %v3574_v0 }
 0xde3   : > { %v2039_v28 = vpop.f32.mrb[22].mxu1 }
 0xde4   : > { %v3110_v29 = vpop.f32.mrb[23].mxu1  ;;  %3120 = vmatmul.mubr.msk.f32.vlgmr.msra.gmra.mrb[16].mxu0 %vm449_vm0, %v2039_v28  ;;  %v2648_v28 = vld [vmem:[#allocation8 + $0x8] sm:$0xff] }
 0xde5   : > { %3140 = vmatprep.mubr.msk.f32.mxu0 %vm3575_vm1, %v3574_v0  ;;  %3237 = vmatpush3.bf16.msra.mxu0 %v3236_v38  ;;  %v3248_v29 = vpack.c.bf16 %v2648_v28, %v2647_v27 }
 0xde6   : > { %3238 = vmatprep.subr.bf16.mxu0 %v3579_v12 }
 0xde7   : > { %v2196_v30 = vpop.f32.mrb[24].mxu1 }
 0xde8   : > { %v3126_v54 = vpop.f32.mrb[25].mxu1  ;;  %v2200_v31 = vsel %vm744_vm2, %v2196_v30, -inf }
 0xde9   : > { %2201 = vmax.xlane.f32.xlu1 %v2200_v31  ;;  %3240 = vmatpush3.bf16.msra.mxu0 %v3239_v42  ;;  %v2650_v54 = vld [vmem:[#allocation8 + $0x18] sm:$0xff] }
 0xdea   : > { %3241 = vmatprep.subr.bf16.mxu0 %v3579_v12 }
 0xe76   : > { %v2202_v32 = vpop.xlane.xlu1 %2201 }
 0xe77   : > { %v2203_v33 = vsub.f32 %v2196_v30, %v2202_v32  ;;  %v2649_v30 = vld [vmem:[#allocation8 + $0x10] sm:$0xff] }
 0xe78   : > { %v3251_v31 = vpack.c.bf16 %v2650_v54, %v2649_v30 }
 0xe79   : > { %v2204_v34 = vmul.f32 1.442695, %v2203_v33 }
 0xe7b   : > { %3364 = vpow2.f32 %v2204_v34 }
 0xe85   : > { %v3365_v35 = vpop.eup %3364 }
 0xe86   : > { %v2206_v41 = vsel %vm744_vm2, %v3365_v35, 0.0 }
 0xe87   : > { %2207 = vadd.xlane.f32.xlu0 %v2206_v41 }
 0xe9d   : > { %2366 = vrot.lane.b32.xlu0 %v3974_v36, %s3578_s19 }
 0xeb7   : > { %v2117_v43 = vpop.f32.mrb[16].mxu0 }
 0xeb8   : > { %v2121_v44 = vadd.f32 %v2117_v43, %v1876_v21  ;;  %v3121_v45 = vpop.f32.mrb[17].mxu0 }
 0xf14   : > { %v2208_v48 = vpop.xlane.xlu0 %2207 }
 0xf15   : > { %3366 = vrcp.f32 %v2208_v48 }
 0xf18   : > { %v2367_v52 = vpop.permute.xlu0 %2366 }
 0xf1f   : > { %v3367_v51 = vpop.eup %3366 }
 0xf20   : > { %v2210_v36 = vmul.f32 %v3367_v51, %v3365_v35  ;;  %v2911_v35 = vld [vmem:[%s4137_s7] ss:$0 sm:$0xff] }
 0xf22   : > { %3130 = vmatmul.mubr.msk.f32.vlgmr.msra.gmra.mrb[26].mxu1 %vm744_vm2, %v2210_v36 }
 0xf23   : > { %3144 = vmatpush3.xpose.msk.msra.mxu1 %vm449_vm0, %v2369_v46  ;;  %3145 = vmatprep.mubr.msk.f32.mxu1 %vm3575_vm1, %v3574_v0 }
 0xf24   : > { %3148 = vmatprep.subr.mxu1 %v3574_v0 }
 0xf26   : > { %3146 = vmatmul.mubr.msk.f32.vlgmr.msra.gmra.mrb[28].mxu1 %vm449_vm0, %v2367_v52 }
 0xf27   : > { %3150 = vmatprep.mubr.msk.f32.mxu1 %vm3575_vm1, %v3574_v0 }
 0xff5   : > { %v2283_v53 = vpop.f32.mrb[26].mxu1 }
 0xff6   : > { %v3131_v56 = vpop.f32.mrb[27].mxu1  ;;  %3141 = vmatmul.mubr.msk.f32.vlgmr.msra.gmra.mrb[18].mxu0 %vm449_vm0, %v2283_v53 }
 0xff7   : > { %3161 = vmatprep.mubr.msk.f32.mxu0 %vm3575_vm1, %v3574_v0  ;;  %3243 = vmatpush3.bf16.msra.mxu0 %v3242_v49 }
 0xff8   : > { %3244 = vmatprep.subr.bf16.mxu0 %v3579_v12 }
 0xff9   : > { %v2440_v57 = vpop.f32.mrb[28].mxu1 }
 0xffa   : > { %v3147_v58 = vpop.f32.mrb[29].mxu1  ;;  %v2444_v59 = vsel %vm744_vm2, %v2440_v57, -inf }
 0xffb   : > { %2445 = vmax.xlane.f32.xlu1 %v2444_v59  ;;  %3246 = vmatpush3.bf16.msra.mxu0 %v3245_v7 }
0x100c   : > { %2455 = vrot.lane.b32.xlu1 %v3978_v39, %s3578_s19  ;;  %s4165_s19 = sld [smem:[#allocation18_spill]] }
0x1012   : > { %s4085_s22 = scalar_lea.hbm %s4165_s19, %s2916_s9 }
0x1088   : > { %v2446_v60 = vpop.xlane.xlu1 %2445 }
0x1089   : > { %v2447_v61 = vsub.f32 %v2440_v57, %v2446_v60 }
0x108b   : > { %v2448_v62 = vmul.f32 1.442695, %v2447_v61 }
0x108c   : > { %v2456_v63 = vpop.permute.xlu1 %2455 }
0x108d   : > { %3368 = vpow2.f32 %v2448_v62  ;;  %3149 = vmatpush3.msra.mxu1 %v2456_v63 }
0x108e   : > { %3247 = vmatprep.subr.bf16.mxu1 %v3579_v12 }
0x1097   : > { %v3369_v1 = vpop.eup %3368 }
0x1098   : > { %v2450_v2 = vsel %vm744_vm2, %v3369_v1, 0.0 }
0x1099   : > { %2451 = vadd.xlane.f32.xlu0 %v2450_v2 }
0x10c9   : > { %v2361_v39 = vpop.f32.mrb[18].mxu0 }
0x10ca   : > { %v2365_v8 = vadd.f32 %v2361_v39, %v2121_v44  ;;  %v3142_v9 = vpop.f32.mrb[19].mxu0 }
0x1126   : > { %v2452_v10 = vpop.xlane.xlu0 %2451 }
0x1127   : > { %3370 = vrcp.f32 %v2452_v10 }
0x1131   : > { %v3371_v11 = vpop.eup %3370 }
0x1132   : > { %v2454_v13 = vmul.f32 %v3371_v11, %v3369_v1 }
0x1134   : > { %3151 = vmatmul.mubr.msk.f32.vlgmr.msra.gmra.mrb[30].mxu1 %vm744_vm2, %v2454_v13 }
0x1135   : > { %3172 = vmatprep.mubr.msk.f32.mxu1 %vm3575_vm1, %v3574_v0  ;;  %3249 = vmatpush3.bf16.msra.mxu1 %v3248_v29 }
0x1136   : > { %3250 = vmatprep.subr.bf16.mxu1 %v3579_v12  ;;  %v2913_v12 = vld [vmem:[%s4136_s6] ss:$0 sm:$0xff] }
0x1139   : > { %3252 = vmatpush3.bf16.msra.mxu1 %v3251_v31 }
0x1207   : > { %v2527_v15 = vpop.f32.mrb[30].mxu1 }
0x1208   : > { %v3152_v16 = vpop.f32.mrb[31].mxu1  ;;  %3162 = vmatmul.mubr.msk.f32.vlgmr.msra.gmra.mrb[20].mxu0 %vm449_vm0, %v2527_v15 }
0x12db   : > { %v2605_v17 = vpop.f32.mrb[20].mxu0 }
0x12dc   : > { %v2609_v19 = vadd.f32 %v2605_v17, %v2365_v8  ;;  %v3163_v20 = vpop.f32.mrb[21].mxu0 }
0x12de   : > { %v2617_v21 = vadd.f32 %v2910_v18, %v2609_v19 }
0x12e0   : > { %v2618_v22 = vadd.f32 %v2617_v21, %v3841_v25 }
0x12e2   : > { %v2619_v23 = vsel %vm449_vm0, %v2618_v22, 0.0 }
0x12e3   : > { %2620 = vadd.xlane.f32.xlu1 %v2619_v23 }
0x1370   : > { %v2621_v47 = vpop.xlane.xlu1 %2620 }
0x1371   : > { %v2623_v24 = vmul.f32 0.03125, %v2621_v47 }
0x1373   : > { %v2624_v0 = vsub.f32 %v2618_v22, %v2623_v24 }
0x1375   : > { %v2625_v14 = vmul.f32 %v2624_v0, %v2624_v0 }
0x1377   : > { %v2626_v26 = vsel %vm449_vm0, %v2625_v14, 0.0 }
0x1378   : > { %2627 = vadd.xlane.f32.xlu0 %v2626_v26 }
0x1405   : > { %v2628_v25 = vpop.xlane.xlu0 %2627 }
0x1406   : > { %v2629_v32 = vmul.f32 0.03125, %v2628_v25 }
0x1408   : > { %v2630_v33 = vadd.f32 1e-05, %v2629_v32 }
0x140a   : > { %3372 = vrsqrt.f32 %v2630_v33 }
0x1414   : > { %v3373_v34 = vpop.eup %3372 }
0x1415   : > { %v2632_v41 = vmul.f32 %v3373_v34, %v2624_v0 }
0x1417   : > { %v2639_v50 = vmul.f32 %v2911_v35, %v2632_v41 }
0x1419   : > { %v2646_v55 = vadd.f32 %v2912_v37, %v2639_v50 }
0x141b   : > { %3173 = vmatmul.mubr.msk.f32.vlgmr.msra.gmra.mrb[32].mxu1 %vm449_vm0, %v2646_v55 }
0x14ee   : > { %v2727_v38 = vpop.f32.mrb[32].mxu1 }
0x14ef   : > { %v2728_v40 = vadd.f32 %v2913_v12, %v2727_v38  ;;  %v3174_v42 = vpop.f32.mrb[33].mxu1 }
0x14f1   : > { %v2731_v43 = vadd.f32 %v2728_v40, %v2646_v55 }
0x14f3   : > { %v2732_v44 = vsel %vm449_vm0, %v2731_v43, 0.0 }
0x14f4   : > { %2733 = vadd.xlane.f32.xlu0 %v2732_v44 }
0x1581   : > { %v2734_v45 = vpop.xlane.xlu0 %2733 }
0x1582   : > { %v2735_v46 = vmul.f32 0.03125, %v2734_v45 }
0x1584   : > { %v2736_v48 = vsub.f32 %v2731_v43, %v2735_v46 }
0x1586   : > { %v2737_v51 = vmul.f32 %v2736_v48, %v2736_v48 }
0x1588   : > { %v2738_v36 = vsel %vm449_vm0, %v2737_v51, 0.0 }
0x1589   : > { %2739 = vadd.xlane.f32.xlu0 %v2738_v36 }
0x1616   : > { %v2740_v52 = vpop.xlane.xlu0 %2739 }
0x1617   : > { %v2741_v53 = vmul.f32 0.03125, %v2740_v52 }
0x1619   : > { %v2742_v56 = vadd.f32 1e-05, %v2741_v53 }
0x161b   : > { %3374 = vrsqrt.f32 %v2742_v56 }
0x1625   : > { %v3375_v57 = vpop.eup %3374 }
0x1626   : > { %v2744_v58 = vmul.f32 %v3375_v57, %v2736_v48 }
0x1628   : > { %v2745_v59 = vmul.f32 %v2911_v35, %v2744_v58 }
0x162a   : > { %v2746_v60 = vadd.f32 %v2912_v37, %v2745_v59 }
0x162c   : > { %2747 = vst.msk [vmem:[%s391_s15] sm:$0xff] %vm449_vm0, %v2746_v60 }
0x162d   : > { %3503 = shalt.err (!%p3500_p4)
}
0x162e   : > { %s3504_s21 = scalar_lea.hbm %s4085_s22, 128  ;;  %s3508_s30 = scalar_lea.hbm %s4165_s19, 256 }
0x162f   : > { %p3505_p0 = scmp.ne.s32.totalorder %s4085_s22, %s3504_s21  ;;  %p3509_p8 = scmp.lt.u32.totalorder %s4085_s22, %s4165_s19 }
0x1630   : > { %p3510_p13 = scmp.lt.u32.totalorder %s3508_s30, %s3504_s21  ;;  %p3512_p10 = scmp.lt.u32.totalorder %s3504_s21, %s4085_s22 }
0x1631   : > { %p3506_p9 = pnand %p3505_p0, %p3773_p5 }
0x1632   : > { %p3511_p6 = por %p3510_p13, %p3509_p8 }
0x1633   : > { %p3507_p11 = pneg %p3506_p9 }
0x1634   : > { %p3513_p3 = por %p3512_p10, %p3511_p6 }
0x1636   : > { %p3514_p7 = pnand %p3513_p3, %p3507_p11 }
0x1638   : > { %3517 = shalt.err (!%p3514_p7)
}
0x1639   : > { %3267 = dma.vmem_to_hbm [thread:$0]  (%p3773_p5), %s4087_s17, 128, %s4085_s22, %s2749_s27  }
0x163a PF: > { %s4166_s15 = sld [smem:[#allocation15_spill]]  ;;  %s4167_s16 = sld [smem:[#allocation16_spill]] }
0x163b   : > { %p4169_p2 = scmp.ge.s32.totalorder %s3564_s12, 2 }
0x1640   : > { %s2774_s25 = sand.u32 1, %s4166_s15   ;;  %p4168_p12 = scmp.ne.s32.totalorder %s4167_s16, 0 }
0x1641   : > { %s2775_s29 = scalar_lea.sflag [#allocation4], %s2774_s25 }
0x1642   : > { %p3284_p1 = pnand %p4169_p2, %p4168_p12 }
0x1644   : > { %3547 = dma.done.wait (!%p3284_p1), %s2775_s29, 128  }
0x1645   : > { %3549 = vsyncadd (!%p3284_p1), %s2775_s29, 4294967168  ;;  %p24_p4 = scmp.ge.s32.totalorder %s3741_s26, 4   ;;  %s4170_s30 = smov %s3556_s10 }
0x1646   : > { %s4171_s10 = smov %s3560_s11  ;;  %s4172_s11 = smov %s3769_s20 }
0x1647   : > { %s4173_s12 = smov %s3741_s26  ;;  %26 = sbr.rel (!%p24_p4) target bundleno = 10 (0xa), region = 120 }
0x164e   :  { %2780 = vsyncpa [#allocation3], 1 }
0x164f   :  { %2782 = vsyncpa [#allocation3 + $0x1], 1 }
0x1650   :  { %2783 = vsyncpa [#allocation6], 1 }
0x1651   :  { %2784 = vsyncpa [#allocation9], 1 }
0x1652   :  { %2785 = vsyncpa [#allocation4], 1 }
0x1653   :  { %2787 = vsyncpa [#allocation4 + $0x1], 1 }

</bundles_post_ra>
